<compile_context>
chip_gen: v5e
topology: v5e:2x2
jax: 0.10.0
libtpu: 0.0.40
codegen_flags: <defaults>
</compile_context>

<pallas_src>
import jax
import jax.numpy as jnp
from jax import lax
from jax.experimental import pallas as pl
from jax.experimental.pallas import tpu as pltpu

HIDDEN = 16
INPUT = 1
OUTPUT = 1


def rnn_linear_kernel(x_ref, h0_ref, wih_ref, whh_ref, bih_ref, bhh_ref,
                      wlin_ref, blin_ref, out_ref, hn_ref):
    """Fused single-layer tanh RNN recurrence + output Linear, fully unrolled.

    x_ref   : (B, T)   lane-dense input (input_size == 1 squeezed away)
    h0_ref  : (B, H)   initial hidden state
    wih_ref : (1, H)   = W_ih^T
    whh_ref : (H, H)   = W_hh^T
    bih_ref : (1, H),  bhh_ref: (1, H)
    wlin_ref: (1, H)   linear.weight
    blin_ref: (1, 1)   linear.bias
    out_ref : (B, T)   per-step linear outputs (dense, stored once)
    hn_ref  : (B, H)   final hidden state
    """
    B, T = x_ref.shape
    H = whh_ref.shape[0]

    x_bt = x_ref[...]                               # (B, T)
    wih = wih_ref[...]                              # (1, H)
    whh = whh_ref[...]                              # (H, H)
    wlin = wlin_ref[...]                            # (1, H)
    blin = blin_ref[...]                            # (1, 1)
    bias = bih_ref[...] + bhh_ref[...]              # (1, H)  hoisted bias pre-add

    # Hoisted input projection: inp[t] = x[:, t] * W_ih^T + (b_ih + b_hh).
    inp = [x_bt[:, t:t + 1] * wih + bias for t in range(T)]      # each (B, H)
    # Hoisted W_hh^T rows, kept resident in vregs for the VPU matvec.
    whh_rows = [whh[i:i + 1, :] for i in range(H)]               # each (1, H)

    col = lax.broadcasted_iota(jnp.int32, (1, T), 1)             # (1, T) column ids

    h = h0_ref[...]                                              # (B, H) f32
    out_acc = jnp.zeros((B, T), jnp.float32)

    for t in range(T):                    # static unroll: T is compile-time const
        # Recurrent matvec on the VPU: rec[b, j] = sum_i h[b, i] * W_hh^T[i, j]
        terms = [h[:, i:i + 1] * whh_rows[i] for i in range(H)]
        while len(terms) > 1:             # balanced add tree (log depth)
            terms = [terms[k] + terms[k + 1] for k in range(0, len(terms), 2)]
        h = jnp.tanh(inp[t] + terms[0])                          # (B, H)

        # Fused Linear(H -> 1); branches off h_t, not on the recurrence chain.
        y_t = jnp.sum(h * wlin, axis=-1, keepdims=True) + blin   # (B, 1)
        out_acc = out_acc + jnp.where(col == t, y_t, 0.0)        # place column t

    out_ref[...] = out_acc.astype(out_ref.dtype)                 # one dense store
    hn_ref[...] = h.astype(hn_ref.dtype)


@jax.jit
def net_forward(x, hidden_prev, params):
    """x: (B, T, 1) float32 (batch_first), hidden_prev: (1, B, H).

    Returns (out, h_n) with out: (1, B*T, 1), h_n: (1, B, H), matching PyTorch.
    """
    wih, whh, bih, bhh, wlin, blin = params
    batch, seq, _ = x.shape

    # View-style squeeze only; no transposes in the wrapper.
    x_bt = x.reshape(batch, seq).astype(jnp.float32)             # (B, T)
    h0 = hidden_prev[0].astype(jnp.float32)                      # (B, H)

    vmem = pl.BlockSpec(memory_space=pltpu.MemorySpace.VMEM)
    out_bt, hn = pl.pallas_call(
        rnn_linear_kernel,
        out_shape=(
            jax.ShapeDtypeStruct((batch, seq), jnp.float32),
            jax.ShapeDtypeStruct((batch, HIDDEN), jnp.float32),
        ),
        in_specs=[vmem] * 8,
        out_specs=(vmem, vmem),
    )(x_bt, h0, wih, whh, bih, bhh, wlin, blin)

    # out.view(-1, hidden) on a batch_first tensor flattens batch-major: (B, T).
    out = out_bt.reshape(batch * seq, OUTPUT)[None]              # (1, B*T, 1)
    return out, hn[None]                                         # (1, B, H)


def init_params(key):
    """Deterministic synthetic params mirroring the PyTorch module's shapes.

    nn.RNN params get normal(0, 0.001) as in __init__; linear gets small values.
    Stored pre-transposed for the kernel.
    """
    k = jax.random.split(key, 6)
    w_ih = 0.001 * jax.random.normal(k[0], (HIDDEN, INPUT), jnp.float32)   # (16, 1)
    w_hh = 0.001 * jax.random.normal(k[1], (HIDDEN, HIDDEN), jnp.float32)  # (16, 16)
    b_ih = 0.001 * jax.random.normal(k[2], (HIDDEN,), jnp.float32)
    b_hh = 0.001 * jax.random.normal(k[3], (HIDDEN,), jnp.float32)
    w_lin = 0.1 * jax.random.normal(k[4], (OUTPUT, HIDDEN), jnp.float32)   # (1, 16)
    b_lin = 0.1 * jax.random.normal(k[5], (OUTPUT,), jnp.float32)

    return (
        w_ih.T,                       # (1, H)   = W_ih^T
        w_hh.T,                       # (H, H)   = W_hh^T
        b_ih.reshape(1, HIDDEN),      # (1, H)
        b_hh.reshape(1, HIDDEN),      # (1, H)
        w_lin.reshape(1, HIDDEN),     # (1, H)   linear.weight
        b_lin.reshape(1, 1),          # (1, 1)   linear.bias
    )


def _reference(x, hidden_prev, params):
    """Pure-JAX reference of the same forward pass (silent sanity check)."""
    wih, whh, bih, bhh, wlin, blin = params
    batch, seq, _ = x.shape
    h = hidden_prev[0]

    def step(h, x_t):
        h_new = jnp.tanh(x_t @ wih + h @ whh + bih + bhh)
        y = h_new @ wlin.T + blin
        return h_new, y

    h_final, ys = lax.scan(step, h, jnp.transpose(x, (1, 0, 2)))  # ys: (T, B, 1)
    out = jnp.transpose(ys, (1, 0, 2)).reshape(batch * seq, OUTPUT)[None]
    return out, h_final[None]


if __name__ == "__main__":
    key = jax.random.PRNGKey(0)
    k_x, k_h, k_p = jax.random.split(key, 3)

    batch, seq = 2, 8
    x = jax.random.normal(k_x, (batch, seq, INPUT), jnp.float32)          # (2, 8, 1)
    hidden_prev = jax.random.normal(k_h, (1, batch, HIDDEN), jnp.float32)  # (1, 2, 16)
    params = init_params(k_p)

    out, hn = net_forward(x, hidden_prev, params)
    jax.block_until_ready((out, hn))

    assert out.shape == (1, batch * seq, OUTPUT)
    assert hn.shape == (1, batch, HIDDEN)

    out_ref, hn_ref = _reference(x, hidden_prev, params)
    assert jnp.allclose(out, out_ref, atol=1e-5), "output mismatch vs reference"
    assert jnp.allclose(hn, hn_ref, atol=1e-5), "hidden mismatch vs reference"

    print("KERNEL_OK")
</pallas_src>

<mosaic_0001>
module attributes {stable_mosaic.version = 11 : i64} {
  func.func @rnn_linear_kernel(%arg0: memref<2x8xf32, #tpu.memory_space<vmem>>, %arg1: memref<2x16xf32, #tpu.memory_space<vmem>>, %arg2: memref<1x16xf32, #tpu.memory_space<vmem>>, %arg3: memref<16x16xf32, #tpu.memory_space<vmem>>, %arg4: memref<1x16xf32, #tpu.memory_space<vmem>>, %arg5: memref<1x16xf32, #tpu.memory_space<vmem>>, %arg6: memref<1x16xf32, #tpu.memory_space<vmem>>, %arg7: memref<1x1xf32, #tpu.memory_space<vmem>>, %arg8: memref<2x8xf32, #tpu.memory_space<vmem>>, %arg9: memref<2x16xf32, #tpu.memory_space<vmem>>) attributes {dimension_semantics = [], scalar_prefetch = 0 : i64, scratch_operands = 0 : i64, tpu.core_type = #tpu.core_type<tc>} {
    %c0 = arith.constant 0 : index
    %c0_0 = arith.constant 0 : index
    %0 = vector.load %arg0[%c0, %c0_0] : memref<2x8xf32, #tpu.memory_space<vmem>>, vector<2x8xf32>
    %c0_1 = arith.constant 0 : index
    %c0_2 = arith.constant 0 : index
    %1 = vector.load %arg2[%c0_1, %c0_2] : memref<1x16xf32, #tpu.memory_space<vmem>>, vector<1x16xf32>
    %c0_3 = arith.constant 0 : index
    %c0_4 = arith.constant 0 : index
    %2 = vector.load %arg3[%c0_3, %c0_4] : memref<16x16xf32, #tpu.memory_space<vmem>>, vector<16x16xf32>
    %c0_5 = arith.constant 0 : index
    %c0_6 = arith.constant 0 : index
    %3 = vector.load %arg6[%c0_5, %c0_6] : memref<1x16xf32, #tpu.memory_space<vmem>>, vector<1x16xf32>
    %c0_7 = arith.constant 0 : index
    %c0_8 = arith.constant 0 : index
    %4 = vector.load %arg7[%c0_7, %c0_8] : memref<1x1xf32, #tpu.memory_space<vmem>>, vector<1x1xf32>
    %c0_9 = arith.constant 0 : index
    %c0_10 = arith.constant 0 : index
    %5 = vector.load %arg4[%c0_9, %c0_10] : memref<1x16xf32, #tpu.memory_space<vmem>>, vector<1x16xf32>
    %c0_11 = arith.constant 0 : index
    %c0_12 = arith.constant 0 : index
    %6 = vector.load %arg5[%c0_11, %c0_12] : memref<1x16xf32, #tpu.memory_space<vmem>>, vector<1x16xf32>
    %7 = arith.addf %5, %6 : vector<1x16xf32>
    %8 = vector.extract_strided_slice %0 {offsets = [0, 0], sizes = [2, 1], strides = [1, 1]} : vector<2x8xf32> to vector<2x1xf32>
    %9 = vector.broadcast %8 : vector<2x1xf32> to vector<2x16xf32>
    %10 = vector.broadcast %1 : vector<1x16xf32> to vector<2x16xf32>
    %11 = arith.mulf %9, %10 : vector<2x16xf32>
    %12 = vector.broadcast %7 : vector<1x16xf32> to vector<2x16xf32>
    %13 = arith.addf %11, %12 : vector<2x16xf32>
    %14 = vector.extract_strided_slice %0 {offsets = [0, 1], sizes = [2, 1], strides = [1, 1]} : vector<2x8xf32> to vector<2x1xf32>
    %15 = vector.broadcast %14 : vector<2x1xf32> to vector<2x16xf32>
    %16 = vector.broadcast %1 : vector<1x16xf32> to vector<2x16xf32>
    %17 = arith.mulf %15, %16 : vector<2x16xf32>
    %18 = vector.broadcast %7 : vector<1x16xf32> to vector<2x16xf32>
    %19 = arith.addf %17, %18 : vector<2x16xf32>
    %20 = vector.extract_strided_slice %0 {offsets = [0, 2], sizes = [2, 1], strides = [1, 1]} : vector<2x8xf32> to vector<2x1xf32>
    %21 = vector.broadcast %20 : vector<2x1xf32> to vector<2x16xf32>
    %22 = vector.broadcast %1 : vector<1x16xf32> to vector<2x16xf32>
    %23 = arith.mulf %21, %22 : vector<2x16xf32>
    %24 = vector.broadcast %7 : vector<1x16xf32> to vector<2x16xf32>
    %25 = arith.addf %23, %24 : vector<2x16xf32>
    %26 = vector.extract_strided_slice %0 {offsets = [0, 3], sizes = [2, 1], strides = [1, 1]} : vector<2x8xf32> to vector<2x1xf32>
    %27 = vector.broadcast %26 : vector<2x1xf32> to vector<2x16xf32>
    %28 = vector.broadcast %1 : vector<1x16xf32> to vector<2x16xf32>
    %29 = arith.mulf %27, %28 : vector<2x16xf32>
    %30 = vector.broadcast %7 : vector<1x16xf32> to vector<2x16xf32>
    %31 = arith.addf %29, %30 : vector<2x16xf32>
    %32 = vector.extract_strided_slice %0 {offsets = [0, 4], sizes = [2, 1], strides = [1, 1]} : vector<2x8xf32> to vector<2x1xf32>
    %33 = vector.broadcast %32 : vector<2x1xf32> to vector<2x16xf32>
    %34 = vector.broadcast %1 : vector<1x16xf32> to vector<2x16xf32>
    %35 = arith.mulf %33, %34 : vector<2x16xf32>
    %36 = vector.broadcast %7 : vector<1x16xf32> to vector<2x16xf32>
    %37 = arith.addf %35, %36 : vector<2x16xf32>
    %38 = vector.extract_strided_slice %0 {offsets = [0, 5], sizes = [2, 1], strides = [1, 1]} : vector<2x8xf32> to vector<2x1xf32>
    %39 = vector.broadcast %38 : vector<2x1xf32> to vector<2x16xf32>
    %40 = vector.broadcast %1 : vector<1x16xf32> to vector<2x16xf32>
    %41 = arith.mulf %39, %40 : vector<2x16xf32>
    %42 = vector.broadcast %7 : vector<1x16xf32> to vector<2x16xf32>
    %43 = arith.addf %41, %42 : vector<2x16xf32>
    %44 = vector.extract_strided_slice %0 {offsets = [0, 6], sizes = [2, 1], strides = [1, 1]} : vector<2x8xf32> to vector<2x1xf32>
    %45 = vector.broadcast %44 : vector<2x1xf32> to vector<2x16xf32>
    %46 = vector.broadcast %1 : vector<1x16xf32> to vector<2x16xf32>
    %47 = arith.mulf %45, %46 : vector<2x16xf32>
    %48 = vector.broadcast %7 : vector<1x16xf32> to vector<2x16xf32>
    %49 = arith.addf %47, %48 : vector<2x16xf32>
    %50 = vector.extract_strided_slice %0 {offsets = [0, 7], sizes = [2, 1], strides = [1, 1]} : vector<2x8xf32> to vector<2x1xf32>
    %51 = vector.broadcast %50 : vector<2x1xf32> to vector<2x16xf32>
    %52 = vector.broadcast %1 : vector<1x16xf32> to vector<2x16xf32>
    %53 = arith.mulf %51, %52 : vector<2x16xf32>
    %54 = vector.broadcast %7 : vector<1x16xf32> to vector<2x16xf32>
    %55 = arith.addf %53, %54 : vector<2x16xf32>
    %56 = vector.extract_strided_slice %2 {offsets = [0, 0], sizes = [1, 16], strides = [1, 1]} : vector<16x16xf32> to vector<1x16xf32>
    %57 = vector.extract_strided_slice %2 {offsets = [1, 0], sizes = [1, 16], strides = [1, 1]} : vector<16x16xf32> to vector<1x16xf32>
    %58 = vector.extract_strided_slice %2 {offsets = [2, 0], sizes = [1, 16], strides = [1, 1]} : vector<16x16xf32> to vector<1x16xf32>
    %59 = vector.extract_strided_slice %2 {offsets = [3, 0], sizes = [1, 16], strides = [1, 1]} : vector<16x16xf32> to vector<1x16xf32>
    %60 = vector.extract_strided_slice %2 {offsets = [4, 0], sizes = [1, 16], strides = [1, 1]} : vector<16x16xf32> to vector<1x16xf32>
    %61 = vector.extract_strided_slice %2 {offsets = [5, 0], sizes = [1, 16], strides = [1, 1]} : vector<16x16xf32> to vector<1x16xf32>
    %62 = vector.extract_strided_slice %2 {offsets = [6, 0], sizes = [1, 16], strides = [1, 1]} : vector<16x16xf32> to vector<1x16xf32>
    %63 = vector.extract_strided_slice %2 {offsets = [7, 0], sizes = [1, 16], strides = [1, 1]} : vector<16x16xf32> to vector<1x16xf32>
    %64 = vector.extract_strided_slice %2 {offsets = [8, 0], sizes = [1, 16], strides = [1, 1]} : vector<16x16xf32> to vector<1x16xf32>
    %65 = vector.extract_strided_slice %2 {offsets = [9, 0], sizes = [1, 16], strides = [1, 1]} : vector<16x16xf32> to vector<1x16xf32>
    %66 = vector.extract_strided_slice %2 {offsets = [10, 0], sizes = [1, 16], strides = [1, 1]} : vector<16x16xf32> to vector<1x16xf32>
    %67 = vector.extract_strided_slice %2 {offsets = [11, 0], sizes = [1, 16], strides = [1, 1]} : vector<16x16xf32> to vector<1x16xf32>
    %68 = vector.extract_strided_slice %2 {offsets = [12, 0], sizes = [1, 16], strides = [1, 1]} : vector<16x16xf32> to vector<1x16xf32>
    %69 = vector.extract_strided_slice %2 {offsets = [13, 0], sizes = [1, 16], strides = [1, 1]} : vector<16x16xf32> to vector<1x16xf32>
    %70 = vector.extract_strided_slice %2 {offsets = [14, 0], sizes = [1, 16], strides = [1, 1]} : vector<16x16xf32> to vector<1x16xf32>
    %71 = vector.extract_strided_slice %2 {offsets = [15, 0], sizes = [1, 16], strides = [1, 1]} : vector<16x16xf32> to vector<1x16xf32>
    %72 = tpu.iota {dimensions = array<i32: 1>} : vector<1x8xi32>
    %c0_13 = arith.constant 0 : index
    %c0_14 = arith.constant 0 : index
    %73 = vector.load %arg1[%c0_13, %c0_14] : memref<2x16xf32, #tpu.memory_space<vmem>>, vector<2x16xf32>
    %cst = arith.constant 0.000000e+00 : f32
    %74 = vector.broadcast %cst : f32 to vector<2x8xf32>
    %75 = vector.extract_strided_slice %73 {offsets = [0, 0], sizes = [2, 1], strides = [1, 1]} : vector<2x16xf32> to vector<2x1xf32>
    %76 = vector.broadcast %75 : vector<2x1xf32> to vector<2x16xf32>
    %77 = vector.broadcast %56 : vector<1x16xf32> to vector<2x16xf32>
    %78 = arith.mulf %76, %77 : vector<2x16xf32>
    %79 = vector.extract_strided_slice %73 {offsets = [0, 1], sizes = [2, 1], strides = [1, 1]} : vector<2x16xf32> to vector<2x1xf32>
    %80 = vector.broadcast %79 : vector<2x1xf32> to vector<2x16xf32>
    %81 = vector.broadcast %57 : vector<1x16xf32> to vector<2x16xf32>
    %82 = arith.mulf %80, %81 : vector<2x16xf32>
    %83 = vector.extract_strided_slice %73 {offsets = [0, 2], sizes = [2, 1], strides = [1, 1]} : vector<2x16xf32> to vector<2x1xf32>
    %84 = vector.broadcast %83 : vector<2x1xf32> to vector<2x16xf32>
    %85 = vector.broadcast %58 : vector<1x16xf32> to vector<2x16xf32>
    %86 = arith.mulf %84, %85 : vector<2x16xf32>
    %87 = vector.extract_strided_slice %73 {offsets = [0, 3], sizes = [2, 1], strides = [1, 1]} : vector<2x16xf32> to vector<2x1xf32>
    %88 = vector.broadcast %87 : vector<2x1xf32> to vector<2x16xf32>
    %89 = vector.broadcast %59 : vector<1x16xf32> to vector<2x16xf32>
    %90 = arith.mulf %88, %89 : vector<2x16xf32>
    %91 = vector.extract_strided_slice %73 {offsets = [0, 4], sizes = [2, 1], strides = [1, 1]} : vector<2x16xf32> to vector<2x1xf32>
    %92 = vector.broadcast %91 : vector<2x1xf32> to vector<2x16xf32>
    %93 = vector.broadcast %60 : vector<1x16xf32> to vector<2x16xf32>
    %94 = arith.mulf %92, %93 : vector<2x16xf32>
    %95 = vector.extract_strided_slice %73 {offsets = [0, 5], sizes = [2, 1], strides = [1, 1]} : vector<2x16xf32> to vector<2x1xf32>
    %96 = vector.broadcast %95 : vector<2x1xf32> to vector<2x16xf32>
    %97 = vector.broadcast %61 : vector<1x16xf32> to vector<2x16xf32>
    %98 = arith.mulf %96, %97 : vector<2x16xf32>
    %99 = vector.extract_strided_slice %73 {offsets = [0, 6], sizes = [2, 1], strides = [1, 1]} : vector<2x16xf32> to vector<2x1xf32>
    %100 = vector.broadcast %99 : vector<2x1xf32> to vector<2x16xf32>
    %101 = vector.broadcast %62 : vector<1x16xf32> to vector<2x16xf32>
    %102 = arith.mulf %100, %101 : vector<2x16xf32>
    %103 = vector.extract_strided_slice %73 {offsets = [0, 7], sizes = [2, 1], strides = [1, 1]} : vector<2x16xf32> to vector<2x1xf32>
    %104 = vector.broadcast %103 : vector<2x1xf32> to vector<2x16xf32>
    %105 = vector.broadcast %63 : vector<1x16xf32> to vector<2x16xf32>
    %106 = arith.mulf %104, %105 : vector<2x16xf32>
    %107 = vector.extract_strided_slice %73 {offsets = [0, 8], sizes = [2, 1], strides = [1, 1]} : vector<2x16xf32> to vector<2x1xf32>
    %108 = vector.broadcast %107 : vector<2x1xf32> to vector<2x16xf32>
    %109 = vector.broadcast %64 : vector<1x16xf32> to vector<2x16xf32>
    %110 = arith.mulf %108, %109 : vector<2x16xf32>
    %111 = vector.extract_strided_slice %73 {offsets = [0, 9], sizes = [2, 1], strides = [1, 1]} : vector<2x16xf32> to vector<2x1xf32>
    %112 = vector.broadcast %111 : vector<2x1xf32> to vector<2x16xf32>
    %113 = vector.broadcast %65 : vector<1x16xf32> to vector<2x16xf32>
    %114 = arith.mulf %112, %113 : vector<2x16xf32>
    %115 = vector.extract_strided_slice %73 {offsets = [0, 10], sizes = [2, 1], strides = [1, 1]} : vector<2x16xf32> to vector<2x1xf32>
    %116 = vector.broadcast %115 : vector<2x1xf32> to vector<2x16xf32>
    %117 = vector.broadcast %66 : vector<1x16xf32> to vector<2x16xf32>
    %118 = arith.mulf %116, %117 : vector<2x16xf32>
    %119 = vector.extract_strided_slice %73 {offsets = [0, 11], sizes = [2, 1], strides = [1, 1]} : vector<2x16xf32> to vector<2x1xf32>
    %120 = vector.broadcast %119 : vector<2x1xf32> to vector<2x16xf32>
    %121 = vector.broadcast %67 : vector<1x16xf32> to vector<2x16xf32>
    %122 = arith.mulf %120, %121 : vector<2x16xf32>
    %123 = vector.extract_strided_slice %73 {offsets = [0, 12], sizes = [2, 1], strides = [1, 1]} : vector<2x16xf32> to vector<2x1xf32>
    %124 = vector.broadcast %123 : vector<2x1xf32> to vector<2x16xf32>
    %125 = vector.broadcast %68 : vector<1x16xf32> to vector<2x16xf32>
    %126 = arith.mulf %124, %125 : vector<2x16xf32>
    %127 = vector.extract_strided_slice %73 {offsets = [0, 13], sizes = [2, 1], strides = [1, 1]} : vector<2x16xf32> to vector<2x1xf32>
    %128 = vector.broadcast %127 : vector<2x1xf32> to vector<2x16xf32>
    %129 = vector.broadcast %69 : vector<1x16xf32> to vector<2x16xf32>
    %130 = arith.mulf %128, %129 : vector<2x16xf32>
    %131 = vector.extract_strided_slice %73 {offsets = [0, 14], sizes = [2, 1], strides = [1, 1]} : vector<2x16xf32> to vector<2x1xf32>
    %132 = vector.broadcast %131 : vector<2x1xf32> to vector<2x16xf32>
    %133 = vector.broadcast %70 : vector<1x16xf32> to vector<2x16xf32>
    %134 = arith.mulf %132, %133 : vector<2x16xf32>
    %135 = vector.extract_strided_slice %73 {offsets = [0, 15], sizes = [2, 1], strides = [1, 1]} : vector<2x16xf32> to vector<2x1xf32>
    %136 = vector.broadcast %135 : vector<2x1xf32> to vector<2x16xf32>
    %137 = vector.broadcast %71 : vector<1x16xf32> to vector<2x16xf32>
    %138 = arith.mulf %136, %137 : vector<2x16xf32>
    %139 = arith.addf %78, %82 : vector<2x16xf32>
    %140 = arith.addf %86, %90 : vector<2x16xf32>
    %141 = arith.addf %94, %98 : vector<2x16xf32>
    %142 = arith.addf %102, %106 : vector<2x16xf32>
    %143 = arith.addf %110, %114 : vector<2x16xf32>
    %144 = arith.addf %118, %122 : vector<2x16xf32>
    %145 = arith.addf %126, %130 : vector<2x16xf32>
    %146 = arith.addf %134, %138 : vector<2x16xf32>
    %147 = arith.addf %139, %140 : vector<2x16xf32>
    %148 = arith.addf %141, %142 : vector<2x16xf32>
    %149 = arith.addf %143, %144 : vector<2x16xf32>
    %150 = arith.addf %145, %146 : vector<2x16xf32>
    %151 = arith.addf %147, %148 : vector<2x16xf32>
    %152 = arith.addf %149, %150 : vector<2x16xf32>
    %153 = arith.addf %151, %152 : vector<2x16xf32>
    %154 = arith.addf %13, %153 : vector<2x16xf32>
    %155 = math.tanh %154 : vector<2x16xf32>
    %156 = vector.broadcast %3 : vector<1x16xf32> to vector<2x16xf32>
    %157 = arith.mulf %155, %156 : vector<2x16xf32>
    %cst_15 = arith.constant dense<0.000000e+00> : vector<2xf32>
    %158 = vector.multi_reduction <add>, %157, %cst_15 [1] : vector<2x16xf32> to vector<2xf32>
    %159 = vector.shape_cast %158 : vector<2xf32> to vector<2x1xf32>
    %160 = vector.broadcast %4 : vector<1x1xf32> to vector<2x1xf32>
    %161 = arith.addf %159, %160 : vector<2x1xf32>
    %c0_i32 = arith.constant 0 : i32
    %162 = vector.broadcast %c0_i32 : i32 to vector<1x8xi32>
    %163 = arith.cmpi eq, %72, %162 : vector<1x8xi32>
    %cst_16 = arith.constant 0.000000e+00 : f32
    %164 = vector.shape_cast %163 : vector<1x8xi1> to vector<1x8xi1>
    %165 = vector.broadcast %164 : vector<1x8xi1> to vector<2x8xi1>
    %166 = vector.shape_cast %161 : vector<2x1xf32> to vector<2x1xf32>
    %167 = vector.broadcast %166 : vector<2x1xf32> to vector<2x8xf32>
    %168 = vector.broadcast %cst_16 : f32 to vector<2x8xf32>
    %169 = arith.select %165, %167, %168 : vector<2x8xi1>, vector<2x8xf32>
    %170 = arith.addf %74, %169 : vector<2x8xf32>
    %171 = vector.extract_strided_slice %155 {offsets = [0, 0], sizes = [2, 1], strides = [1, 1]} : vector<2x16xf32> to vector<2x1xf32>
    %172 = vector.broadcast %171 : vector<2x1xf32> to vector<2x16xf32>
    %173 = vector.broadcast %56 : vector<1x16xf32> to vector<2x16xf32>
    %174 = arith.mulf %172, %173 : vector<2x16xf32>
    %175 = vector.extract_strided_slice %155 {offsets = [0, 1], sizes = [2, 1], strides = [1, 1]} : vector<2x16xf32> to vector<2x1xf32>
    %176 = vector.broadcast %175 : vector<2x1xf32> to vector<2x16xf32>
    %177 = vector.broadcast %57 : vector<1x16xf32> to vector<2x16xf32>
    %178 = arith.mulf %176, %177 : vector<2x16xf32>
    %179 = vector.extract_strided_slice %155 {offsets = [0, 2], sizes = [2, 1], strides = [1, 1]} : vector<2x16xf32> to vector<2x1xf32>
    %180 = vector.broadcast %179 : vector<2x1xf32> to vector<2x16xf32>
    %181 = vector.broadcast %58 : vector<1x16xf32> to vector<2x16xf32>
    %182 = arith.mulf %180, %181 : vector<2x16xf32>
    %183 = vector.extract_strided_slice %155 {offsets = [0, 3], sizes = [2, 1], strides = [1, 1]} : vector<2x16xf32> to vector<2x1xf32>
    %184 = vector.broadcast %183 : vector<2x1xf32> to vector<2x16xf32>
    %185 = vector.broadcast %59 : vector<1x16xf32> to vector<2x16xf32>
    %186 = arith.mulf %184, %185 : vector<2x16xf32>
    %187 = vector.extract_strided_slice %155 {offsets = [0, 4], sizes = [2, 1], strides = [1, 1]} : vector<2x16xf32> to vector<2x1xf32>
    %188 = vector.broadcast %187 : vector<2x1xf32> to vector<2x16xf32>
    %189 = vector.broadcast %60 : vector<1x16xf32> to vector<2x16xf32>
    %190 = arith.mulf %188, %189 : vector<2x16xf32>
    %191 = vector.extract_strided_slice %155 {offsets = [0, 5], sizes = [2, 1], strides = [1, 1]} : vector<2x16xf32> to vector<2x1xf32>
    %192 = vector.broadcast %191 : vector<2x1xf32> to vector<2x16xf32>
    %193 = vector.broadcast %61 : vector<1x16xf32> to vector<2x16xf32>
    %194 = arith.mulf %192, %193 : vector<2x16xf32>
    %195 = vector.extract_strided_slice %155 {offsets = [0, 6], sizes = [2, 1], strides = [1, 1]} : vector<2x16xf32> to vector<2x1xf32>
    %196 = vector.broadcast %195 : vector<2x1xf32> to vector<2x16xf32>
    %197 = vector.broadcast %62 : vector<1x16xf32> to vector<2x16xf32>
    %198 = arith.mulf %196, %197 : vector<2x16xf32>
    %199 = vector.extract_strided_slice %155 {offsets = [0, 7], sizes = [2, 1], strides = [1, 1]} : vector<2x16xf32> to vector<2x1xf32>
    %200 = vector.broadcast %199 : vector<2x1xf32> to vector<2x16xf32>
    %201 = vector.broadcast %63 : vector<1x16xf32> to vector<2x16xf32>
    %202 = arith.mulf %200, %201 : vector<2x16xf32>
    %203 = vector.extract_strided_slice %155 {offsets = [0, 8], sizes = [2, 1], strides = [1, 1]} : vector<2x16xf32> to vector<2x1xf32>
    %204 = vector.broadcast %203 : vector<2x1xf32> to vector<2x16xf32>
    %205 = vector.broadcast %64 : vector<1x16xf32> to vector<2x16xf32>
    %206 = arith.mulf %204, %205 : vector<2x16xf32>
    %207 = vector.extract_strided_slice %155 {offsets = [0, 9], sizes = [2, 1], strides = [1, 1]} : vector<2x16xf32> to vector<2x1xf32>
    %208 = vector.broadcast %207 : vector<2x1xf32> to vector<2x16xf32>
    %209 = vector.broadcast %65 : vector<1x16xf32> to vector<2x16xf32>
    %210 = arith.mulf %208, %209 : vector<2x16xf32>
    %211 = vector.extract_strided_slice %155 {offsets = [0, 10], sizes = [2, 1], strides = [1, 1]} : vector<2x16xf32> to vector<2x1xf32>
    %212 = vector.broadcast %211 : vector<2x1xf32> to vector<2x16xf32>
    %213 = vector.broadcast %66 : vector<1x16xf32> to vector<2x16xf32>
    %214 = arith.mulf %212, %213 : vector<2x16xf32>
    %215 = vector.extract_strided_slice %155 {offsets = [0, 11], sizes = [2, 1], strides = [1, 1]} : vector<2x16xf32> to vector<2x1xf32>
    %216 = vector.broadcast %215 : vector<2x1xf32> to vector<2x16xf32>
    %217 = vector.broadcast %67 : vector<1x16xf32> to vector<2x16xf32>
    %218 = arith.mulf %216, %217 : vector<2x16xf32>
    %219 = vector.extract_strided_slice %155 {offsets = [0, 12], sizes = [2, 1], strides = [1, 1]} : vector<2x16xf32> to vector<2x1xf32>
    %220 = vector.broadcast %219 : vector<2x1xf32> to vector<2x16xf32>
    %221 = vector.broadcast %68 : vector<1x16xf32> to vector<2x16xf32>
    %222 = arith.mulf %220, %221 : vector<2x16xf32>
    %223 = vector.extract_strided_slice %155 {offsets = [0, 13], sizes = [2, 1], strides = [1, 1]} : vector<2x16xf32> to vector<2x1xf32>
    %224 = vector.broadcast %223 : vector<2x1xf32> to vector<2x16xf32>
    %225 = vector.broadcast %69 : vector<1x16xf32> to vector<2x16xf32>
    %226 = arith.mulf %224, %225 : vector<2x16xf32>
    %227 = vector.extract_strided_slice %155 {offsets = [0, 14], sizes = [2, 1], strides = [1, 1]} : vector<2x16xf32> to vector<2x1xf32>
    %228 = vector.broadcast %227 : vector<2x1xf32> to vector<2x16xf32>
    %229 = vector.broadcast %70 : vector<1x16xf32> to vector<2x16xf32>
    %230 = arith.mulf %228, %229 : vector<2x16xf32>
    %231 = vector.extract_strided_slice %155 {offsets = [0, 15], sizes = [2, 1], strides = [1, 1]} : vector<2x16xf32> to vector<2x1xf32>
    %232 = vector.broadcast %231 : vector<2x1xf32> to vector<2x16xf32>
    %233 = vector.broadcast %71 : vector<1x16xf32> to vector<2x16xf32>
    %234 = arith.mulf %232, %233 : vector<2x16xf32>
    %235 = arith.addf %174, %178 : vector<2x16xf32>
    %236 = arith.addf %182, %186 : vector<2x16xf32>
    %237 = arith.addf %190, %194 : vector<2x16xf32>
    %238 = arith.addf %198, %202 : vector<2x16xf32>
    %239 = arith.addf %206, %210 : vector<2x16xf32>
    %240 = arith.addf %214, %218 : vector<2x16xf32>
    %241 = arith.addf %222, %226 : vector<2x16xf32>
    %242 = arith.addf %230, %234 : vector<2x16xf32>
    %243 = arith.addf %235, %236 : vector<2x16xf32>
    %244 = arith.addf %237, %238 : vector<2x16xf32>
    %245 = arith.addf %239, %240 : vector<2x16xf32>
    %246 = arith.addf %241, %242 : vector<2x16xf32>
    %247 = arith.addf %243, %244 : vector<2x16xf32>
    %248 = arith.addf %245, %246 : vector<2x16xf32>
    %249 = arith.addf %247, %248 : vector<2x16xf32>
    %250 = arith.addf %19, %249 : vector<2x16xf32>
    %251 = math.tanh %250 : vector<2x16xf32>
    %252 = vector.broadcast %3 : vector<1x16xf32> to vector<2x16xf32>
    %253 = arith.mulf %251, %252 : vector<2x16xf32>
    %cst_17 = arith.constant dense<0.000000e+00> : vector<2xf32>
    %254 = vector.multi_reduction <add>, %253, %cst_17 [1] : vector<2x16xf32> to vector<2xf32>
    %255 = vector.shape_cast %254 : vector<2xf32> to vector<2x1xf32>
    %256 = vector.broadcast %4 : vector<1x1xf32> to vector<2x1xf32>
    %257 = arith.addf %255, %256 : vector<2x1xf32>
    %c1_i32 = arith.constant 1 : i32
    %258 = vector.broadcast %c1_i32 : i32 to vector<1x8xi32>
    %259 = arith.cmpi eq, %72, %258 : vector<1x8xi32>
    %cst_18 = arith.constant 0.000000e+00 : f32
    %260 = vector.shape_cast %259 : vector<1x8xi1> to vector<1x8xi1>
    %261 = vector.broadcast %260 : vector<1x8xi1> to vector<2x8xi1>
    %262 = vector.shape_cast %257 : vector<2x1xf32> to vector<2x1xf32>
    %263 = vector.broadcast %262 : vector<2x1xf32> to vector<2x8xf32>
    %264 = vector.broadcast %cst_18 : f32 to vector<2x8xf32>
    %265 = arith.select %261, %263, %264 : vector<2x8xi1>, vector<2x8xf32>
    %266 = arith.addf %170, %265 : vector<2x8xf32>
    %267 = vector.extract_strided_slice %251 {offsets = [0, 0], sizes = [2, 1], strides = [1, 1]} : vector<2x16xf32> to vector<2x1xf32>
    %268 = vector.broadcast %267 : vector<2x1xf32> to vector<2x16xf32>
    %269 = vector.broadcast %56 : vector<1x16xf32> to vector<2x16xf32>
    %270 = arith.mulf %268, %269 : vector<2x16xf32>
    %271 = vector.extract_strided_slice %251 {offsets = [0, 1], sizes = [2, 1], strides = [1, 1]} : vector<2x16xf32> to vector<2x1xf32>
    %272 = vector.broadcast %271 : vector<2x1xf32> to vector<2x16xf32>
    %273 = vector.broadcast %57 : vector<1x16xf32> to vector<2x16xf32>
    %274 = arith.mulf %272, %273 : vector<2x16xf32>
    %275 = vector.extract_strided_slice %251 {offsets = [0, 2], sizes = [2, 1], strides = [1, 1]} : vector<2x16xf32> to vector<2x1xf32>
    %276 = vector.broadcast %275 : vector<2x1xf32> to vector<2x16xf32>
    %277 = vector.broadcast %58 : vector<1x16xf32> to vector<2x16xf32>
    %278 = arith.mulf %276, %277 : vector<2x16xf32>
    %279 = vector.extract_strided_slice %251 {offsets = [0, 3], sizes = [2, 1], strides = [1, 1]} : vector<2x16xf32> to vector<2x1xf32>
    %280 = vector.broadcast %279 : vector<2x1xf32> to vector<2x16xf32>
    %281 = vector.broadcast %59 : vector<1x16xf32> to vector<2x16xf32>
    %282 = arith.mulf %280, %281 : vector<2x16xf32>
    %283 = vector.extract_strided_slice %251 {offsets = [0, 4], sizes = [2, 1], strides = [1, 1]} : vector<2x16xf32> to vector<2x1xf32>
    %284 = vector.broadcast %283 : vector<2x1xf32> to vector<2x16xf32>
    %285 = vector.broadcast %60 : vector<1x16xf32> to vector<2x16xf32>
    %286 = arith.mulf %284, %285 : vector<2x16xf32>
    %287 = vector.extract_strided_slice %251 {offsets = [0, 5], sizes = [2, 1], strides = [1, 1]} : vector<2x16xf32> to vector<2x1xf32>
    %288 = vector.broadcast %287 : vector<2x1xf32> to vector<2x16xf32>
    %289 = vector.broadcast %61 : vector<1x16xf32> to vector<2x16xf32>
    %290 = arith.mulf %288, %289 : vector<2x16xf32>
    %291 = vector.extract_strided_slice %251 {offsets = [0, 6], sizes = [2, 1], strides = [1, 1]} : vector<2x16xf32> to vector<2x1xf32>
    %292 = vector.broadcast %291 : vector<2x1xf32> to vector<2x16xf32>
    %293 = vector.broadcast %62 : vector<1x16xf32> to vector<2x16xf32>
    %294 = arith.mulf %292, %293 : vector<2x16xf32>
    %295 = vector.extract_strided_slice %251 {offsets = [0, 7], sizes = [2, 1], strides = [1, 1]} : vector<2x16xf32> to vector<2x1xf32>
    %296 = vector.broadcast %295 : vector<2x1xf32> to vector<2x16xf32>
    %297 = vector.broadcast %63 : vector<1x16xf32> to vector<2x16xf32>
    %298 = arith.mulf %296, %297 : vector<2x16xf32>
    %299 = vector.extract_strided_slice %251 {offsets = [0, 8], sizes = [2, 1], strides = [1, 1]} : vector<2x16xf32> to vector<2x1xf32>
    %300 = vector.broadcast %299 : vector<2x1xf32> to vector<2x16xf32>
    %301 = vector.broadcast %64 : vector<1x16xf32> to vector<2x16xf32>
    %302 = arith.mulf %300, %301 : vector<2x16xf32>
    %303 = vector.extract_strided_slice %251 {offsets = [0, 9], sizes = [2, 1], strides = [1, 1]} : vector<2x16xf32> to vector<2x1xf32>
    %304 = vector.broadcast %303 : vector<2x1xf32> to vector<2x16xf32>
    %305 = vector.broadcast %65 : vector<1x16xf32> to vector<2x16xf32>
    %306 = arith.mulf %304, %305 : vector<2x16xf32>
    %307 = vector.extract_strided_slice %251 {offsets = [0, 10], sizes = [2, 1], strides = [1, 1]} : vector<2x16xf32> to vector<2x1xf32>
    %308 = vector.broadcast %307 : vector<2x1xf32> to vector<2x16xf32>
    %309 = vector.broadcast %66 : vector<1x16xf32> to vector<2x16xf32>
    %310 = arith.mulf %308, %309 : vector<2x16xf32>
    %311 = vector.extract_strided_slice %251 {offsets = [0, 11], sizes = [2, 1], strides = [1, 1]} : vector<2x16xf32> to vector<2x1xf32>
    %312 = vector.broadcast %311 : vector<2x1xf32> to vector<2x16xf32>
    %313 = vector.broadcast %67 : vector<1x16xf32> to vector<2x16xf32>
    %314 = arith.mulf %312, %313 : vector<2x16xf32>
    %315 = vector.extract_strided_slice %251 {offsets = [0, 12], sizes = [2, 1], strides = [1, 1]} : vector<2x16xf32> to vector<2x1xf32>
    %316 = vector.broadcast %315 : vector<2x1xf32> to vector<2x16xf32>
    %317 = vector.broadcast %68 : vector<1x16xf32> to vector<2x16xf32>
    %318 = arith.mulf %316, %317 : vector<2x16xf32>
    %319 = vector.extract_strided_slice %251 {offsets = [0, 13], sizes = [2, 1], strides = [1, 1]} : vector<2x16xf32> to vector<2x1xf32>
    %320 = vector.broadcast %319 : vector<2x1xf32> to vector<2x16xf32>
    %321 = vector.broadcast %69 : vector<1x16xf32> to vector<2x16xf32>
    %322 = arith.mulf %320, %321 : vector<2x16xf32>
    %323 = vector.extract_strided_slice %251 {offsets = [0, 14], sizes = [2, 1], strides = [1, 1]} : vector<2x16xf32> to vector<2x1xf32>
    %324 = vector.broadcast %323 : vector<2x1xf32> to vector<2x16xf32>
    %325 = vector.broadcast %70 : vector<1x16xf32> to vector<2x16xf32>
    %326 = arith.mulf %324, %325 : vector<2x16xf32>
    %327 = vector.extract_strided_slice %251 {offsets = [0, 15], sizes = [2, 1], strides = [1, 1]} : vector<2x16xf32> to vector<2x1xf32>
    %328 = vector.broadcast %327 : vector<2x1xf32> to vector<2x16xf32>
    %329 = vector.broadcast %71 : vector<1x16xf32> to vector<2x16xf32>
    %330 = arith.mulf %328, %329 : vector<2x16xf32>
    %331 = arith.addf %270, %274 : vector<2x16xf32>
    %332 = arith.addf %278, %282 : vector<2x16xf32>
    %333 = arith.addf %286, %290 : vector<2x16xf32>
    %334 = arith.addf %294, %298 : vector<2x16xf32>
    %335 = arith.addf %302, %306 : vector<2x16xf32>
    %336 = arith.addf %310, %314 : vector<2x16xf32>
    %337 = arith.addf %318, %322 : vector<2x16xf32>
    %338 = arith.addf %326, %330 : vector<2x16xf32>
    %339 = arith.addf %331, %332 : vector<2x16xf32>
    %340 = arith.addf %333, %334 : vector<2x16xf32>
    %341 = arith.addf %335, %336 : vector<2x16xf32>
    %342 = arith.addf %337, %338 : vector<2x16xf32>
    %343 = arith.addf %339, %340 : vector<2x16xf32>
    %344 = arith.addf %341, %342 : vector<2x16xf32>
    %345 = arith.addf %343, %344 : vector<2x16xf32>
    %346 = arith.addf %25, %345 : vector<2x16xf32>
    %347 = math.tanh %346 : vector<2x16xf32>
    %348 = vector.broadcast %3 : vector<1x16xf32> to vector<2x16xf32>
    %349 = arith.mulf %347, %348 : vector<2x16xf32>
    %cst_19 = arith.constant dense<0.000000e+00> : vector<2xf32>
    %350 = vector.multi_reduction <add>, %349, %cst_19 [1] : vector<2x16xf32> to vector<2xf32>
    %351 = vector.shape_cast %350 : vector<2xf32> to vector<2x1xf32>
    %352 = vector.broadcast %4 : vector<1x1xf32> to vector<2x1xf32>
    %353 = arith.addf %351, %352 : vector<2x1xf32>
    %c2_i32 = arith.constant 2 : i32
    %354 = vector.broadcast %c2_i32 : i32 to vector<1x8xi32>
    %355 = arith.cmpi eq, %72, %354 : vector<1x8xi32>
    %cst_20 = arith.constant 0.000000e+00 : f32
    %356 = vector.shape_cast %355 : vector<1x8xi1> to vector<1x8xi1>
    %357 = vector.broadcast %356 : vector<1x8xi1> to vector<2x8xi1>
    %358 = vector.shape_cast %353 : vector<2x1xf32> to vector<2x1xf32>
    %359 = vector.broadcast %358 : vector<2x1xf32> to vector<2x8xf32>
    %360 = vector.broadcast %cst_20 : f32 to vector<2x8xf32>
    %361 = arith.select %357, %359, %360 : vector<2x8xi1>, vector<2x8xf32>
    %362 = arith.addf %266, %361 : vector<2x8xf32>
    %363 = vector.extract_strided_slice %347 {offsets = [0, 0], sizes = [2, 1], strides = [1, 1]} : vector<2x16xf32> to vector<2x1xf32>
    %364 = vector.broadcast %363 : vector<2x1xf32> to vector<2x16xf32>
    %365 = vector.broadcast %56 : vector<1x16xf32> to vector<2x16xf32>
    %366 = arith.mulf %364, %365 : vector<2x16xf32>
    %367 = vector.extract_strided_slice %347 {offsets = [0, 1], sizes = [2, 1], strides = [1, 1]} : vector<2x16xf32> to vector<2x1xf32>
    %368 = vector.broadcast %367 : vector<2x1xf32> to vector<2x16xf32>
    %369 = vector.broadcast %57 : vector<1x16xf32> to vector<2x16xf32>
    %370 = arith.mulf %368, %369 : vector<2x16xf32>
    %371 = vector.extract_strided_slice %347 {offsets = [0, 2], sizes = [2, 1], strides = [1, 1]} : vector<2x16xf32> to vector<2x1xf32>
    %372 = vector.broadcast %371 : vector<2x1xf32> to vector<2x16xf32>
    %373 = vector.broadcast %58 : vector<1x16xf32> to vector<2x16xf32>
    %374 = arith.mulf %372, %373 : vector<2x16xf32>
    %375 = vector.extract_strided_slice %347 {offsets = [0, 3], sizes = [2, 1], strides = [1, 1]} : vector<2x16xf32> to vector<2x1xf32>
    %376 = vector.broadcast %375 : vector<2x1xf32> to vector<2x16xf32>
    %377 = vector.broadcast %59 : vector<1x16xf32> to vector<2x16xf32>
    %378 = arith.mulf %376, %377 : vector<2x16xf32>
    %379 = vector.extract_strided_slice %347 {offsets = [0, 4], sizes = [2, 1], strides = [1, 1]} : vector<2x16xf32> to vector<2x1xf32>
    %380 = vector.broadcast %379 : vector<2x1xf32> to vector<2x16xf32>
    %381 = vector.broadcast %60 : vector<1x16xf32> to vector<2x16xf32>
    %382 = arith.mulf %380, %381 : vector<2x16xf32>
    %383 = vector.extract_strided_slice %347 {offsets = [0, 5], sizes = [2, 1], strides = [1, 1]} : vector<2x16xf32> to vector<2x1xf32>
    %384 = vector.broadcast %383 : vector<2x1xf32> to vector<2x16xf32>
    %385 = vector.broadcast %61 : vector<1x16xf32> to vector<2x16xf32>
    %386 = arith.mulf %384, %385 : vector<2x16xf32>
    %387 = vector.extract_strided_slice %347 {offsets = [0, 6], sizes = [2, 1], strides = [1, 1]} : vector<2x16xf32> to vector<2x1xf32>
    %388 = vector.broadcast %387 : vector<2x1xf32> to vector<2x16xf32>
    %389 = vector.broadcast %62 : vector<1x16xf32> to vector<2x16xf32>
    %390 = arith.mulf %388, %389 : vector<2x16xf32>
    %391 = vector.extract_strided_slice %347 {offsets = [0, 7], sizes = [2, 1], strides = [1, 1]} : vector<2x16xf32> to vector<2x1xf32>
    %392 = vector.broadcast %391 : vector<2x1xf32> to vector<2x16xf32>
    %393 = vector.broadcast %63 : vector<1x16xf32> to vector<2x16xf32>
    %394 = arith.mulf %392, %393 : vector<2x16xf32>
    %395 = vector.extract_strided_slice %347 {offsets = [0, 8], sizes = [2, 1], strides = [1, 1]} : vector<2x16xf32> to vector<2x1xf32>
    %396 = vector.broadcast %395 : vector<2x1xf32> to vector<2x16xf32>
    %397 = vector.broadcast %64 : vector<1x16xf32> to vector<2x16xf32>
    %398 = arith.mulf %396, %397 : vector<2x16xf32>
    %399 = vector.extract_strided_slice %347 {offsets = [0, 9], sizes = [2, 1], strides = [1, 1]} : vector<2x16xf32> to vector<2x1xf32>
    %400 = vector.broadcast %399 : vector<2x1xf32> to vector<2x16xf32>
    %401 = vector.broadcast %65 : vector<1x16xf32> to vector<2x16xf32>
    %402 = arith.mulf %400, %401 : vector<2x16xf32>
    %403 = vector.extract_strided_slice %347 {offsets = [0, 10], sizes = [2, 1], strides = [1, 1]} : vector<2x16xf32> to vector<2x1xf32>
    %404 = vector.broadcast %403 : vector<2x1xf32> to vector<2x16xf32>
    %405 = vector.broadcast %66 : vector<1x16xf32> to vector<2x16xf32>
    %406 = arith.mulf %404, %405 : vector<2x16xf32>
    %407 = vector.extract_strided_slice %347 {offsets = [0, 11], sizes = [2, 1], strides = [1, 1]} : vector<2x16xf32> to vector<2x1xf32>
    %408 = vector.broadcast %407 : vector<2x1xf32> to vector<2x16xf32>
    %409 = vector.broadcast %67 : vector<1x16xf32> to vector<2x16xf32>
    %410 = arith.mulf %408, %409 : vector<2x16xf32>
    %411 = vector.extract_strided_slice %347 {offsets = [0, 12], sizes = [2, 1], strides = [1, 1]} : vector<2x16xf32> to vector<2x1xf32>
    %412 = vector.broadcast %411 : vector<2x1xf32> to vector<2x16xf32>
    %413 = vector.broadcast %68 : vector<1x16xf32> to vector<2x16xf32>
    %414 = arith.mulf %412, %413 : vector<2x16xf32>
    %415 = vector.extract_strided_slice %347 {offsets = [0, 13], sizes = [2, 1], strides = [1, 1]} : vector<2x16xf32> to vector<2x1xf32>
    %416 = vector.broadcast %415 : vector<2x1xf32> to vector<2x16xf32>
    %417 = vector.broadcast %69 : vector<1x16xf32> to vector<2x16xf32>
    %418 = arith.mulf %416, %417 : vector<2x16xf32>
    %419 = vector.extract_strided_slice %347 {offsets = [0, 14], sizes = [2, 1], strides = [1, 1]} : vector<2x16xf32> to vector<2x1xf32>
    %420 = vector.broadcast %419 : vector<2x1xf32> to vector<2x16xf32>
    %421 = vector.broadcast %70 : vector<1x16xf32> to vector<2x16xf32>
    %422 = arith.mulf %420, %421 : vector<2x16xf32>
    %423 = vector.extract_strided_slice %347 {offsets = [0, 15], sizes = [2, 1], strides = [1, 1]} : vector<2x16xf32> to vector<2x1xf32>
    %424 = vector.broadcast %423 : vector<2x1xf32> to vector<2x16xf32>
    %425 = vector.broadcast %71 : vector<1x16xf32> to vector<2x16xf32>
    %426 = arith.mulf %424, %425 : vector<2x16xf32>
    %427 = arith.addf %366, %370 : vector<2x16xf32>
    %428 = arith.addf %374, %378 : vector<2x16xf32>
    %429 = arith.addf %382, %386 : vector<2x16xf32>
    %430 = arith.addf %390, %394 : vector<2x16xf32>
    %431 = arith.addf %398, %402 : vector<2x16xf32>
    %432 = arith.addf %406, %410 : vector<2x16xf32>
    %433 = arith.addf %414, %418 : vector<2x16xf32>
    %434 = arith.addf %422, %426 : vector<2x16xf32>
    %435 = arith.addf %427, %428 : vector<2x16xf32>
    %436 = arith.addf %429, %430 : vector<2x16xf32>
    %437 = arith.addf %431, %432 : vector<2x16xf32>
    %438 = arith.addf %433, %434 : vector<2x16xf32>
    %439 = arith.addf %435, %436 : vector<2x16xf32>
    %440 = arith.addf %437, %438 : vector<2x16xf32>
    %441 = arith.addf %439, %440 : vector<2x16xf32>
    %442 = arith.addf %31, %441 : vector<2x16xf32>
    %443 = math.tanh %442 : vector<2x16xf32>
    %444 = vector.broadcast %3 : vector<1x16xf32> to vector<2x16xf32>
    %445 = arith.mulf %443, %444 : vector<2x16xf32>
    %cst_21 = arith.constant dense<0.000000e+00> : vector<2xf32>
    %446 = vector.multi_reduction <add>, %445, %cst_21 [1] : vector<2x16xf32> to vector<2xf32>
    %447 = vector.shape_cast %446 : vector<2xf32> to vector<2x1xf32>
    %448 = vector.broadcast %4 : vector<1x1xf32> to vector<2x1xf32>
    %449 = arith.addf %447, %448 : vector<2x1xf32>
    %c3_i32 = arith.constant 3 : i32
    %450 = vector.broadcast %c3_i32 : i32 to vector<1x8xi32>
    %451 = arith.cmpi eq, %72, %450 : vector<1x8xi32>
    %cst_22 = arith.constant 0.000000e+00 : f32
    %452 = vector.shape_cast %451 : vector<1x8xi1> to vector<1x8xi1>
    %453 = vector.broadcast %452 : vector<1x8xi1> to vector<2x8xi1>
    %454 = vector.shape_cast %449 : vector<2x1xf32> to vector<2x1xf32>
    %455 = vector.broadcast %454 : vector<2x1xf32> to vector<2x8xf32>
    %456 = vector.broadcast %cst_22 : f32 to vector<2x8xf32>
    %457 = arith.select %453, %455, %456 : vector<2x8xi1>, vector<2x8xf32>
    %458 = arith.addf %362, %457 : vector<2x8xf32>
    %459 = vector.extract_strided_slice %443 {offsets = [0, 0], sizes = [2, 1], strides = [1, 1]} : vector<2x16xf32> to vector<2x1xf32>
    %460 = vector.broadcast %459 : vector<2x1xf32> to vector<2x16xf32>
    %461 = vector.broadcast %56 : vector<1x16xf32> to vector<2x16xf32>
    %462 = arith.mulf %460, %461 : vector<2x16xf32>
    %463 = vector.extract_strided_slice %443 {offsets = [0, 1], sizes = [2, 1], strides = [1, 1]} : vector<2x16xf32> to vector<2x1xf32>
    %464 = vector.broadcast %463 : vector<2x1xf32> to vector<2x16xf32>
    %465 = vector.broadcast %57 : vector<1x16xf32> to vector<2x16xf32>
    %466 = arith.mulf %464, %465 : vector<2x16xf32>
    %467 = vector.extract_strided_slice %443 {offsets = [0, 2], sizes = [2, 1], strides = [1, 1]} : vector<2x16xf32> to vector<2x1xf32>
    %468 = vector.broadcast %467 : vector<2x1xf32> to vector<2x16xf32>
    %469 = vector.broadcast %58 : vector<1x16xf32> to vector<2x16xf32>
    %470 = arith.mulf %468, %469 : vector<2x16xf32>
    %471 = vector.extract_strided_slice %443 {offsets = [0, 3], sizes = [2, 1], strides = [1, 1]} : vector<2x16xf32> to vector<2x1xf32>
    %472 = vector.broadcast %471 : vector<2x1xf32> to vector<2x16xf32>
    %473 = vector.broadcast %59 : vector<1x16xf32> to vector<2x16xf32>
    %474 = arith.mulf %472, %473 : vector<2x16xf32>
    %475 = vector.extract_strided_slice %443 {offsets = [0, 4], sizes = [2, 1], strides = [1, 1]} : vector<2x16xf32> to vector<2x1xf32>
    %476 = vector.broadcast %475 : vector<2x1xf32> to vector<2x16xf32>
    %477 = vector.broadcast %60 : vector<1x16xf32> to vector<2x16xf32>
    %478 = arith.mulf %476, %477 : vector<2x16xf32>
    %479 = vector.extract_strided_slice %443 {offsets = [0, 5], sizes = [2, 1], strides = [1, 1]} : vector<2x16xf32> to vector<2x1xf32>
    %480 = vector.broadcast %479 : vector<2x1xf32> to vector<2x16xf32>
    %481 = vector.broadcast %61 : vector<1x16xf32> to vector<2x16xf32>
    %482 = arith.mulf %480, %481 : vector<2x16xf32>
    %483 = vector.extract_strided_slice %443 {offsets = [0, 6], sizes = [2, 1], strides = [1, 1]} : vector<2x16xf32> to vector<2x1xf32>
    %484 = vector.broadcast %483 : vector<2x1xf32> to vector<2x16xf32>
    %485 = vector.broadcast %62 : vector<1x16xf32> to vector<2x16xf32>
    %486 = arith.mulf %484, %485 : vector<2x16xf32>
    %487 = vector.extract_strided_slice %443 {offsets = [0, 7], sizes = [2, 1], strides = [1, 1]} : vector<2x16xf32> to vector<2x1xf32>
    %488 = vector.broadcast %487 : vector<2x1xf32> to vector<2x16xf32>
    %489 = vector.broadcast %63 : vector<1x16xf32> to vector<2x16xf32>
    %490 = arith.mulf %488, %489 : vector<2x16xf32>
    %491 = vector.extract_strided_slice %443 {offsets = [0, 8], sizes = [2, 1], strides = [1, 1]} : vector<2x16xf32> to vector<2x1xf32>
    %492 = vector.broadcast %491 : vector<2x1xf32> to vector<2x16xf32>
    %493 = vector.broadcast %64 : vector<1x16xf32> to vector<2x16xf32>
    %494 = arith.mulf %492, %493 : vector<2x16xf32>
    %495 = vector.extract_strided_slice %443 {offsets = [0, 9], sizes = [2, 1], strides = [1, 1]} : vector<2x16xf32> to vector<2x1xf32>
    %496 = vector.broadcast %495 : vector<2x1xf32> to vector<2x16xf32>
    %497 = vector.broadcast %65 : vector<1x16xf32> to vector<2x16xf32>
    %498 = arith.mulf %496, %497 : vector<2x16xf32>
    %499 = vector.extract_strided_slice %443 {offsets = [0, 10], sizes = [2, 1], strides = [1, 1]} : vector<2x16xf32> to vector<2x1xf32>
    %500 = vector.broadcast %499 : vector<2x1xf32> to vector<2x16xf32>
    %501 = vector.broadcast %66 : vector<1x16xf32> to vector<2x16xf32>
    %502 = arith.mulf %500, %501 : vector<2x16xf32>
    %503 = vector.extract_strided_slice %443 {offsets = [0, 11], sizes = [2, 1], strides = [1, 1]} : vector<2x16xf32> to vector<2x1xf32>
    %504 = vector.broadcast %503 : vector<2x1xf32> to vector<2x16xf32>
    %505 = vector.broadcast %67 : vector<1x16xf32> to vector<2x16xf32>
    %506 = arith.mulf %504, %505 : vector<2x16xf32>
    %507 = vector.extract_strided_slice %443 {offsets = [0, 12], sizes = [2, 1], strides = [1, 1]} : vector<2x16xf32> to vector<2x1xf32>
    %508 = vector.broadcast %507 : vector<2x1xf32> to vector<2x16xf32>
    %509 = vector.broadcast %68 : vector<1x16xf32> to vector<2x16xf32>
    %510 = arith.mulf %508, %509 : vector<2x16xf32>
    %511 = vector.extract_strided_slice %443 {offsets = [0, 13], sizes = [2, 1], strides = [1, 1]} : vector<2x16xf32> to vector<2x1xf32>
    %512 = vector.broadcast %511 : vector<2x1xf32> to vector<2x16xf32>
    %513 = vector.broadcast %69 : vector<1x16xf32> to vector<2x16xf32>
    %514 = arith.mulf %512, %513 : vector<2x16xf32>
    %515 = vector.extract_strided_slice %443 {offsets = [0, 14], sizes = [2, 1], strides = [1, 1]} : vector<2x16xf32> to vector<2x1xf32>
    %516 = vector.broadcast %515 : vector<2x1xf32> to vector<2x16xf32>
    %517 = vector.broadcast %70 : vector<1x16xf32> to vector<2x16xf32>
    %518 = arith.mulf %516, %517 : vector<2x16xf32>
    %519 = vector.extract_strided_slice %443 {offsets = [0, 15], sizes = [2, 1], strides = [1, 1]} : vector<2x16xf32> to vector<2x1xf32>
    %520 = vector.broadcast %519 : vector<2x1xf32> to vector<2x16xf32>
    %521 = vector.broadcast %71 : vector<1x16xf32> to vector<2x16xf32>
    %522 = arith.mulf %520, %521 : vector<2x16xf32>
    %523 = arith.addf %462, %466 : vector<2x16xf32>
    %524 = arith.addf %470, %474 : vector<2x16xf32>
    %525 = arith.addf %478, %482 : vector<2x16xf32>
    %526 = arith.addf %486, %490 : vector<2x16xf32>
    %527 = arith.addf %494, %498 : vector<2x16xf32>
    %528 = arith.addf %502, %506 : vector<2x16xf32>
    %529 = arith.addf %510, %514 : vector<2x16xf32>
    %530 = arith.addf %518, %522 : vector<2x16xf32>
    %531 = arith.addf %523, %524 : vector<2x16xf32>
    %532 = arith.addf %525, %526 : vector<2x16xf32>
    %533 = arith.addf %527, %528 : vector<2x16xf32>
    %534 = arith.addf %529, %530 : vector<2x16xf32>
    %535 = arith.addf %531, %532 : vector<2x16xf32>
    %536 = arith.addf %533, %534 : vector<2x16xf32>
    %537 = arith.addf %535, %536 : vector<2x16xf32>
    %538 = arith.addf %37, %537 : vector<2x16xf32>
    %539 = math.tanh %538 : vector<2x16xf32>
    %540 = vector.broadcast %3 : vector<1x16xf32> to vector<2x16xf32>
    %541 = arith.mulf %539, %540 : vector<2x16xf32>
    %cst_23 = arith.constant dense<0.000000e+00> : vector<2xf32>
    %542 = vector.multi_reduction <add>, %541, %cst_23 [1] : vector<2x16xf32> to vector<2xf32>
    %543 = vector.shape_cast %542 : vector<2xf32> to vector<2x1xf32>
    %544 = vector.broadcast %4 : vector<1x1xf32> to vector<2x1xf32>
    %545 = arith.addf %543, %544 : vector<2x1xf32>
    %c4_i32 = arith.constant 4 : i32
    %546 = vector.broadcast %c4_i32 : i32 to vector<1x8xi32>
    %547 = arith.cmpi eq, %72, %546 : vector<1x8xi32>
    %cst_24 = arith.constant 0.000000e+00 : f32
    %548 = vector.shape_cast %547 : vector<1x8xi1> to vector<1x8xi1>
    %549 = vector.broadcast %548 : vector<1x8xi1> to vector<2x8xi1>
    %550 = vector.shape_cast %545 : vector<2x1xf32> to vector<2x1xf32>
    %551 = vector.broadcast %550 : vector<2x1xf32> to vector<2x8xf32>
    %552 = vector.broadcast %cst_24 : f32 to vector<2x8xf32>
    %553 = arith.select %549, %551, %552 : vector<2x8xi1>, vector<2x8xf32>
    %554 = arith.addf %458, %553 : vector<2x8xf32>
    %555 = vector.extract_strided_slice %539 {offsets = [0, 0], sizes = [2, 1], strides = [1, 1]} : vector<2x16xf32> to vector<2x1xf32>
    %556 = vector.broadcast %555 : vector<2x1xf32> to vector<2x16xf32>
    %557 = vector.broadcast %56 : vector<1x16xf32> to vector<2x16xf32>
    %558 = arith.mulf %556, %557 : vector<2x16xf32>
    %559 = vector.extract_strided_slice %539 {offsets = [0, 1], sizes = [2, 1], strides = [1, 1]} : vector<2x16xf32> to vector<2x1xf32>
    %560 = vector.broadcast %559 : vector<2x1xf32> to vector<2x16xf32>
    %561 = vector.broadcast %57 : vector<1x16xf32> to vector<2x16xf32>
    %562 = arith.mulf %560, %561 : vector<2x16xf32>
    %563 = vector.extract_strided_slice %539 {offsets = [0, 2], sizes = [2, 1], strides = [1, 1]} : vector<2x16xf32> to vector<2x1xf32>
    %564 = vector.broadcast %563 : vector<2x1xf32> to vector<2x16xf32>
    %565 = vector.broadcast %58 : vector<1x16xf32> to vector<2x16xf32>
    %566 = arith.mulf %564, %565 : vector<2x16xf32>
    %567 = vector.extract_strided_slice %539 {offsets = [0, 3], sizes = [2, 1], strides = [1, 1]} : vector<2x16xf32> to vector<2x1xf32>
    %568 = vector.broadcast %567 : vector<2x1xf32> to vector<2x16xf32>
    %569 = vector.broadcast %59 : vector<1x16xf32> to vector<2x16xf32>
    %570 = arith.mulf %568, %569 : vector<2x16xf32>
    %571 = vector.extract_strided_slice %539 {offsets = [0, 4], sizes = [2, 1], strides = [1, 1]} : vector<2x16xf32> to vector<2x1xf32>
    %572 = vector.broadcast %571 : vector<2x1xf32> to vector<2x16xf32>
    %573 = vector.broadcast %60 : vector<1x16xf32> to vector<2x16xf32>
    %574 = arith.mulf %572, %573 : vector<2x16xf32>
    %575 = vector.extract_strided_slice %539 {offsets = [0, 5], sizes = [2, 1], strides = [1, 1]} : vector<2x16xf32> to vector<2x1xf32>
    %576 = vector.broadcast %575 : vector<2x1xf32> to vector<2x16xf32>
    %577 = vector.broadcast %61 : vector<1x16xf32> to vector<2x16xf32>
    %578 = arith.mulf %576, %577 : vector<2x16xf32>
    %579 = vector.extract_strided_slice %539 {offsets = [0, 6], sizes = [2, 1], strides = [1, 1]} : vector<2x16xf32> to vector<2x1xf32>
    %580 = vector.broadcast %579 : vector<2x1xf32> to vector<2x16xf32>
    %581 = vector.broadcast %62 : vector<1x16xf32> to vector<2x16xf32>
    %582 = arith.mulf %580, %581 : vector<2x16xf32>
    %583 = vector.extract_strided_slice %539 {offsets = [0, 7], sizes = [2, 1], strides = [1, 1]} : vector<2x16xf32> to vector<2x1xf32>
    %584 = vector.broadcast %583 : vector<2x1xf32> to vector<2x16xf32>
    %585 = vector.broadcast %63 : vector<1x16xf32> to vector<2x16xf32>
    %586 = arith.mulf %584, %585 : vector<2x16xf32>
    %587 = vector.extract_strided_slice %539 {offsets = [0, 8], sizes = [2, 1], strides = [1, 1]} : vector<2x16xf32> to vector<2x1xf32>
    %588 = vector.broadcast %587 : vector<2x1xf32> to vector<2x16xf32>
    %589 = vector.broadcast %64 : vector<1x16xf32> to vector<2x16xf32>
    %590 = arith.mulf %588, %589 : vector<2x16xf32>
    %591 = vector.extract_strided_slice %539 {offsets = [0, 9], sizes = [2, 1], strides = [1, 1]} : vector<2x16xf32> to vector<2x1xf32>
    %592 = vector.broadcast %591 : vector<2x1xf32> to vector<2x16xf32>
    %593 = vector.broadcast %65 : vector<1x16xf32> to vector<2x16xf32>
    %594 = arith.mulf %592, %593 : vector<2x16xf32>
    %595 = vector.extract_strided_slice %539 {offsets = [0, 10], sizes = [2, 1], strides = [1, 1]} : vector<2x16xf32> to vector<2x1xf32>
    %596 = vector.broadcast %595 : vector<2x1xf32> to vector<2x16xf32>
    %597 = vector.broadcast %66 : vector<1x16xf32> to vector<2x16xf32>
    %598 = arith.mulf %596, %597 : vector<2x16xf32>
    %599 = vector.extract_strided_slice %539 {offsets = [0, 11], sizes = [2, 1], strides = [1, 1]} : vector<2x16xf32> to vector<2x1xf32>
    %600 = vector.broadcast %599 : vector<2x1xf32> to vector<2x16xf32>
    %601 = vector.broadcast %67 : vector<1x16xf32> to vector<2x16xf32>
    %602 = arith.mulf %600, %601 : vector<2x16xf32>
    %603 = vector.extract_strided_slice %539 {offsets = [0, 12], sizes = [2, 1], strides = [1, 1]} : vector<2x16xf32> to vector<2x1xf32>
    %604 = vector.broadcast %603 : vector<2x1xf32> to vector<2x16xf32>
    %605 = vector.broadcast %68 : vector<1x16xf32> to vector<2x16xf32>
    %606 = arith.mulf %604, %605 : vector<2x16xf32>
    %607 = vector.extract_strided_slice %539 {offsets = [0, 13], sizes = [2, 1], strides = [1, 1]} : vector<2x16xf32> to vector<2x1xf32>
    %608 = vector.broadcast %607 : vector<2x1xf32> to vector<2x16xf32>
    %609 = vector.broadcast %69 : vector<1x16xf32> to vector<2x16xf32>
    %610 = arith.mulf %608, %609 : vector<2x16xf32>
    %611 = vector.extract_strided_slice %539 {offsets = [0, 14], sizes = [2, 1], strides = [1, 1]} : vector<2x16xf32> to vector<2x1xf32>
    %612 = vector.broadcast %611 : vector<2x1xf32> to vector<2x16xf32>
    %613 = vector.broadcast %70 : vector<1x16xf32> to vector<2x16xf32>
    %614 = arith.mulf %612, %613 : vector<2x16xf32>
    %615 = vector.extract_strided_slice %539 {offsets = [0, 15], sizes = [2, 1], strides = [1, 1]} : vector<2x16xf32> to vector<2x1xf32>
    %616 = vector.broadcast %615 : vector<2x1xf32> to vector<2x16xf32>
    %617 = vector.broadcast %71 : vector<1x16xf32> to vector<2x16xf32>
    %618 = arith.mulf %616, %617 : vector<2x16xf32>
    %619 = arith.addf %558, %562 : vector<2x16xf32>
    %620 = arith.addf %566, %570 : vector<2x16xf32>
    %621 = arith.addf %574, %578 : vector<2x16xf32>
    %622 = arith.addf %582, %586 : vector<2x16xf32>
    %623 = arith.addf %590, %594 : vector<2x16xf32>
    %624 = arith.addf %598, %602 : vector<2x16xf32>
    %625 = arith.addf %606, %610 : vector<2x16xf32>
    %626 = arith.addf %614, %618 : vector<2x16xf32>
    %627 = arith.addf %619, %620 : vector<2x16xf32>
    %628 = arith.addf %621, %622 : vector<2x16xf32>
    %629 = arith.addf %623, %624 : vector<2x16xf32>
    %630 = arith.addf %625, %626 : vector<2x16xf32>
    %631 = arith.addf %627, %628 : vector<2x16xf32>
    %632 = arith.addf %629, %630 : vector<2x16xf32>
    %633 = arith.addf %631, %632 : vector<2x16xf32>
    %634 = arith.addf %43, %633 : vector<2x16xf32>
    %635 = math.tanh %634 : vector<2x16xf32>
    %636 = vector.broadcast %3 : vector<1x16xf32> to vector<2x16xf32>
    %637 = arith.mulf %635, %636 : vector<2x16xf32>
    %cst_25 = arith.constant dense<0.000000e+00> : vector<2xf32>
    %638 = vector.multi_reduction <add>, %637, %cst_25 [1] : vector<2x16xf32> to vector<2xf32>
    %639 = vector.shape_cast %638 : vector<2xf32> to vector<2x1xf32>
    %640 = vector.broadcast %4 : vector<1x1xf32> to vector<2x1xf32>
    %641 = arith.addf %639, %640 : vector<2x1xf32>
    %c5_i32 = arith.constant 5 : i32
    %642 = vector.broadcast %c5_i32 : i32 to vector<1x8xi32>
    %643 = arith.cmpi eq, %72, %642 : vector<1x8xi32>
    %cst_26 = arith.constant 0.000000e+00 : f32
    %644 = vector.shape_cast %643 : vector<1x8xi1> to vector<1x8xi1>
    %645 = vector.broadcast %644 : vector<1x8xi1> to vector<2x8xi1>
    %646 = vector.shape_cast %641 : vector<2x1xf32> to vector<2x1xf32>
    %647 = vector.broadcast %646 : vector<2x1xf32> to vector<2x8xf32>
    %648 = vector.broadcast %cst_26 : f32 to vector<2x8xf32>
    %649 = arith.select %645, %647, %648 : vector<2x8xi1>, vector<2x8xf32>
    %650 = arith.addf %554, %649 : vector<2x8xf32>
    %651 = vector.extract_strided_slice %635 {offsets = [0, 0], sizes = [2, 1], strides = [1, 1]} : vector<2x16xf32> to vector<2x1xf32>
    %652 = vector.broadcast %651 : vector<2x1xf32> to vector<2x16xf32>
    %653 = vector.broadcast %56 : vector<1x16xf32> to vector<2x16xf32>
    %654 = arith.mulf %652, %653 : vector<2x16xf32>
    %655 = vector.extract_strided_slice %635 {offsets = [0, 1], sizes = [2, 1], strides = [1, 1]} : vector<2x16xf32> to vector<2x1xf32>
    %656 = vector.broadcast %655 : vector<2x1xf32> to vector<2x16xf32>
    %657 = vector.broadcast %57 : vector<1x16xf32> to vector<2x16xf32>
    %658 = arith.mulf %656, %657 : vector<2x16xf32>
    %659 = vector.extract_strided_slice %635 {offsets = [0, 2], sizes = [2, 1], strides = [1, 1]} : vector<2x16xf32> to vector<2x1xf32>
    %660 = vector.broadcast %659 : vector<2x1xf32> to vector<2x16xf32>
    %661 = vector.broadcast %58 : vector<1x16xf32> to vector<2x16xf32>
    %662 = arith.mulf %660, %661 : vector<2x16xf32>
    %663 = vector.extract_strided_slice %635 {offsets = [0, 3], sizes = [2, 1], strides = [1, 1]} : vector<2x16xf32> to vector<2x1xf32>
    %664 = vector.broadcast %663 : vector<2x1xf32> to vector<2x16xf32>
    %665 = vector.broadcast %59 : vector<1x16xf32> to vector<2x16xf32>
    %666 = arith.mulf %664, %665 : vector<2x16xf32>
    %667 = vector.extract_strided_slice %635 {offsets = [0, 4], sizes = [2, 1], strides = [1, 1]} : vector<2x16xf32> to vector<2x1xf32>
    %668 = vector.broadcast %667 : vector<2x1xf32> to vector<2x16xf32>
    %669 = vector.broadcast %60 : vector<1x16xf32> to vector<2x16xf32>
    %670 = arith.mulf %668, %669 : vector<2x16xf32>
    %671 = vector.extract_strided_slice %635 {offsets = [0, 5], sizes = [2, 1], strides = [1, 1]} : vector<2x16xf32> to vector<2x1xf32>
    %672 = vector.broadcast %671 : vector<2x1xf32> to vector<2x16xf32>
    %673 = vector.broadcast %61 : vector<1x16xf32> to vector<2x16xf32>
    %674 = arith.mulf %672, %673 : vector<2x16xf32>
    %675 = vector.extract_strided_slice %635 {offsets = [0, 6], sizes = [2, 1], strides = [1, 1]} : vector<2x16xf32> to vector<2x1xf32>
    %676 = vector.broadcast %675 : vector<2x1xf32> to vector<2x16xf32>
    %677 = vector.broadcast %62 : vector<1x16xf32> to vector<2x16xf32>
    %678 = arith.mulf %676, %677 : vector<2x16xf32>
    %679 = vector.extract_strided_slice %635 {offsets = [0, 7], sizes = [2, 1], strides = [1, 1]} : vector<2x16xf32> to vector<2x1xf32>
    %680 = vector.broadcast %679 : vector<2x1xf32> to vector<2x16xf32>
    %681 = vector.broadcast %63 : vector<1x16xf32> to vector<2x16xf32>
    %682 = arith.mulf %680, %681 : vector<2x16xf32>
    %683 = vector.extract_strided_slice %635 {offsets = [0, 8], sizes = [2, 1], strides = [1, 1]} : vector<2x16xf32> to vector<2x1xf32>
    %684 = vector.broadcast %683 : vector<2x1xf32> to vector<2x16xf32>
    %685 = vector.broadcast %64 : vector<1x16xf32> to vector<2x16xf32>
    %686 = arith.mulf %684, %685 : vector<2x16xf32>
    %687 = vector.extract_strided_slice %635 {offsets = [0, 9], sizes = [2, 1], strides = [1, 1]} : vector<2x16xf32> to vector<2x1xf32>
    %688 = vector.broadcast %687 : vector<2x1xf32> to vector<2x16xf32>
    %689 = vector.broadcast %65 : vector<1x16xf32> to vector<2x16xf32>
    %690 = arith.mulf %688, %689 : vector<2x16xf32>
    %691 = vector.extract_strided_slice %635 {offsets = [0, 10], sizes = [2, 1], strides = [1, 1]} : vector<2x16xf32> to vector<2x1xf32>
    %692 = vector.broadcast %691 : vector<2x1xf32> to vector<2x16xf32>
    %693 = vector.broadcast %66 : vector<1x16xf32> to vector<2x16xf32>
    %694 = arith.mulf %692, %693 : vector<2x16xf32>
    %695 = vector.extract_strided_slice %635 {offsets = [0, 11], sizes = [2, 1], strides = [1, 1]} : vector<2x16xf32> to vector<2x1xf32>
    %696 = vector.broadcast %695 : vector<2x1xf32> to vector<2x16xf32>
    %697 = vector.broadcast %67 : vector<1x16xf32> to vector<2x16xf32>
    %698 = arith.mulf %696, %697 : vector<2x16xf32>
    %699 = vector.extract_strided_slice %635 {offsets = [0, 12], sizes = [2, 1], strides = [1, 1]} : vector<2x16xf32> to vector<2x1xf32>
    %700 = vector.broadcast %699 : vector<2x1xf32> to vector<2x16xf32>
    %701 = vector.broadcast %68 : vector<1x16xf32> to vector<2x16xf32>
    %702 = arith.mulf %700, %701 : vector<2x16xf32>
    %703 = vector.extract_strided_slice %635 {offsets = [0, 13], sizes = [2, 1], strides = [1, 1]} : vector<2x16xf32> to vector<2x1xf32>
    %704 = vector.broadcast %703 : vector<2x1xf32> to vector<2x16xf32>
    %705 = vector.broadcast %69 : vector<1x16xf32> to vector<2x16xf32>
    %706 = arith.mulf %704, %705 : vector<2x16xf32>
    %707 = vector.extract_strided_slice %635 {offsets = [0, 14], sizes = [2, 1], strides = [1, 1]} : vector<2x16xf32> to vector<2x1xf32>
    %708 = vector.broadcast %707 : vector<2x1xf32> to vector<2x16xf32>
    %709 = vector.broadcast %70 : vector<1x16xf32> to vector<2x16xf32>
    %710 = arith.mulf %708, %709 : vector<2x16xf32>
    %711 = vector.extract_strided_slice %635 {offsets = [0, 15], sizes = [2, 1], strides = [1, 1]} : vector<2x16xf32> to vector<2x1xf32>
    %712 = vector.broadcast %711 : vector<2x1xf32> to vector<2x16xf32>
    %713 = vector.broadcast %71 : vector<1x16xf32> to vector<2x16xf32>
    %714 = arith.mulf %712, %713 : vector<2x16xf32>
    %715 = arith.addf %654, %658 : vector<2x16xf32>
    %716 = arith.addf %662, %666 : vector<2x16xf32>
    %717 = arith.addf %670, %674 : vector<2x16xf32>
    %718 = arith.addf %678, %682 : vector<2x16xf32>
    %719 = arith.addf %686, %690 : vector<2x16xf32>
    %720 = arith.addf %694, %698 : vector<2x16xf32>
    %721 = arith.addf %702, %706 : vector<2x16xf32>
    %722 = arith.addf %710, %714 : vector<2x16xf32>
    %723 = arith.addf %715, %716 : vector<2x16xf32>
    %724 = arith.addf %717, %718 : vector<2x16xf32>
    %725 = arith.addf %719, %720 : vector<2x16xf32>
    %726 = arith.addf %721, %722 : vector<2x16xf32>
    %727 = arith.addf %723, %724 : vector<2x16xf32>
    %728 = arith.addf %725, %726 : vector<2x16xf32>
    %729 = arith.addf %727, %728 : vector<2x16xf32>
    %730 = arith.addf %49, %729 : vector<2x16xf32>
    %731 = math.tanh %730 : vector<2x16xf32>
    %732 = vector.broadcast %3 : vector<1x16xf32> to vector<2x16xf32>
    %733 = arith.mulf %731, %732 : vector<2x16xf32>
    %cst_27 = arith.constant dense<0.000000e+00> : vector<2xf32>
    %734 = vector.multi_reduction <add>, %733, %cst_27 [1] : vector<2x16xf32> to vector<2xf32>
    %735 = vector.shape_cast %734 : vector<2xf32> to vector<2x1xf32>
    %736 = vector.broadcast %4 : vector<1x1xf32> to vector<2x1xf32>
    %737 = arith.addf %735, %736 : vector<2x1xf32>
    %c6_i32 = arith.constant 6 : i32
    %738 = vector.broadcast %c6_i32 : i32 to vector<1x8xi32>
    %739 = arith.cmpi eq, %72, %738 : vector<1x8xi32>
    %cst_28 = arith.constant 0.000000e+00 : f32
    %740 = vector.shape_cast %739 : vector<1x8xi1> to vector<1x8xi1>
    %741 = vector.broadcast %740 : vector<1x8xi1> to vector<2x8xi1>
    %742 = vector.shape_cast %737 : vector<2x1xf32> to vector<2x1xf32>
    %743 = vector.broadcast %742 : vector<2x1xf32> to vector<2x8xf32>
    %744 = vector.broadcast %cst_28 : f32 to vector<2x8xf32>
    %745 = arith.select %741, %743, %744 : vector<2x8xi1>, vector<2x8xf32>
    %746 = arith.addf %650, %745 : vector<2x8xf32>
    %747 = vector.extract_strided_slice %731 {offsets = [0, 0], sizes = [2, 1], strides = [1, 1]} : vector<2x16xf32> to vector<2x1xf32>
    %748 = vector.broadcast %747 : vector<2x1xf32> to vector<2x16xf32>
    %749 = vector.broadcast %56 : vector<1x16xf32> to vector<2x16xf32>
    %750 = arith.mulf %748, %749 : vector<2x16xf32>
    %751 = vector.extract_strided_slice %731 {offsets = [0, 1], sizes = [2, 1], strides = [1, 1]} : vector<2x16xf32> to vector<2x1xf32>
    %752 = vector.broadcast %751 : vector<2x1xf32> to vector<2x16xf32>
    %753 = vector.broadcast %57 : vector<1x16xf32> to vector<2x16xf32>
    %754 = arith.mulf %752, %753 : vector<2x16xf32>
    %755 = vector.extract_strided_slice %731 {offsets = [0, 2], sizes = [2, 1], strides = [1, 1]} : vector<2x16xf32> to vector<2x1xf32>
    %756 = vector.broadcast %755 : vector<2x1xf32> to vector<2x16xf32>
    %757 = vector.broadcast %58 : vector<1x16xf32> to vector<2x16xf32>
    %758 = arith.mulf %756, %757 : vector<2x16xf32>
    %759 = vector.extract_strided_slice %731 {offsets = [0, 3], sizes = [2, 1], strides = [1, 1]} : vector<2x16xf32> to vector<2x1xf32>
    %760 = vector.broadcast %759 : vector<2x1xf32> to vector<2x16xf32>
    %761 = vector.broadcast %59 : vector<1x16xf32> to vector<2x16xf32>
    %762 = arith.mulf %760, %761 : vector<2x16xf32>
    %763 = vector.extract_strided_slice %731 {offsets = [0, 4], sizes = [2, 1], strides = [1, 1]} : vector<2x16xf32> to vector<2x1xf32>
    %764 = vector.broadcast %763 : vector<2x1xf32> to vector<2x16xf32>
    %765 = vector.broadcast %60 : vector<1x16xf32> to vector<2x16xf32>
    %766 = arith.mulf %764, %765 : vector<2x16xf32>
    %767 = vector.extract_strided_slice %731 {offsets = [0, 5], sizes = [2, 1], strides = [1, 1]} : vector<2x16xf32> to vector<2x1xf32>
    %768 = vector.broadcast %767 : vector<2x1xf32> to vector<2x16xf32>
    %769 = vector.broadcast %61 : vector<1x16xf32> to vector<2x16xf32>
    %770 = arith.mulf %768, %769 : vector<2x16xf32>
    %771 = vector.extract_strided_slice %731 {offsets = [0, 6], sizes = [2, 1], strides = [1, 1]} : vector<2x16xf32> to vector<2x1xf32>
    %772 = vector.broadcast %771 : vector<2x1xf32> to vector<2x16xf32>
    %773 = vector.broadcast %62 : vector<1x16xf32> to vector<2x16xf32>
    %774 = arith.mulf %772, %773 : vector<2x16xf32>
    %775 = vector.extract_strided_slice %731 {offsets = [0, 7], sizes = [2, 1], strides = [1, 1]} : vector<2x16xf32> to vector<2x1xf32>
    %776 = vector.broadcast %775 : vector<2x1xf32> to vector<2x16xf32>
    %777 = vector.broadcast %63 : vector<1x16xf32> to vector<2x16xf32>
    %778 = arith.mulf %776, %777 : vector<2x16xf32>
    %779 = vector.extract_strided_slice %731 {offsets = [0, 8], sizes = [2, 1], strides = [1, 1]} : vector<2x16xf32> to vector<2x1xf32>
    %780 = vector.broadcast %779 : vector<2x1xf32> to vector<2x16xf32>
    %781 = vector.broadcast %64 : vector<1x16xf32> to vector<2x16xf32>
    %782 = arith.mulf %780, %781 : vector<2x16xf32>
    %783 = vector.extract_strided_slice %731 {offsets = [0, 9], sizes = [2, 1], strides = [1, 1]} : vector<2x16xf32> to vector<2x1xf32>
    %784 = vector.broadcast %783 : vector<2x1xf32> to vector<2x16xf32>
    %785 = vector.broadcast %65 : vector<1x16xf32> to vector<2x16xf32>
    %786 = arith.mulf %784, %785 : vector<2x16xf32>
    %787 = vector.extract_strided_slice %731 {offsets = [0, 10], sizes = [2, 1], strides = [1, 1]} : vector<2x16xf32> to vector<2x1xf32>
    %788 = vector.broadcast %787 : vector<2x1xf32> to vector<2x16xf32>
    %789 = vector.broadcast %66 : vector<1x16xf32> to vector<2x16xf32>
    %790 = arith.mulf %788, %789 : vector<2x16xf32>
    %791 = vector.extract_strided_slice %731 {offsets = [0, 11], sizes = [2, 1], strides = [1, 1]} : vector<2x16xf32> to vector<2x1xf32>
    %792 = vector.broadcast %791 : vector<2x1xf32> to vector<2x16xf32>
    %793 = vector.broadcast %67 : vector<1x16xf32> to vector<2x16xf32>
    %794 = arith.mulf %792, %793 : vector<2x16xf32>
    %795 = vector.extract_strided_slice %731 {offsets = [0, 12], sizes = [2, 1], strides = [1, 1]} : vector<2x16xf32> to vector<2x1xf32>
    %796 = vector.broadcast %795 : vector<2x1xf32> to vector<2x16xf32>
    %797 = vector.broadcast %68 : vector<1x16xf32> to vector<2x16xf32>
    %798 = arith.mulf %796, %797 : vector<2x16xf32>
    %799 = vector.extract_strided_slice %731 {offsets = [0, 13], sizes = [2, 1], strides = [1, 1]} : vector<2x16xf32> to vector<2x1xf32>
    %800 = vector.broadcast %799 : vector<2x1xf32> to vector<2x16xf32>
    %801 = vector.broadcast %69 : vector<1x16xf32> to vector<2x16xf32>
    %802 = arith.mulf %800, %801 : vector<2x16xf32>
    %803 = vector.extract_strided_slice %731 {offsets = [0, 14], sizes = [2, 1], strides = [1, 1]} : vector<2x16xf32> to vector<2x1xf32>
    %804 = vector.broadcast %803 : vector<2x1xf32> to vector<2x16xf32>
    %805 = vector.broadcast %70 : vector<1x16xf32> to vector<2x16xf32>
    %806 = arith.mulf %804, %805 : vector<2x16xf32>
    %807 = vector.extract_strided_slice %731 {offsets = [0, 15], sizes = [2, 1], strides = [1, 1]} : vector<2x16xf32> to vector<2x1xf32>
    %808 = vector.broadcast %807 : vector<2x1xf32> to vector<2x16xf32>
    %809 = vector.broadcast %71 : vector<1x16xf32> to vector<2x16xf32>
    %810 = arith.mulf %808, %809 : vector<2x16xf32>
    %811 = arith.addf %750, %754 : vector<2x16xf32>
    %812 = arith.addf %758, %762 : vector<2x16xf32>
    %813 = arith.addf %766, %770 : vector<2x16xf32>
    %814 = arith.addf %774, %778 : vector<2x16xf32>
    %815 = arith.addf %782, %786 : vector<2x16xf32>
    %816 = arith.addf %790, %794 : vector<2x16xf32>
    %817 = arith.addf %798, %802 : vector<2x16xf32>
    %818 = arith.addf %806, %810 : vector<2x16xf32>
    %819 = arith.addf %811, %812 : vector<2x16xf32>
    %820 = arith.addf %813, %814 : vector<2x16xf32>
    %821 = arith.addf %815, %816 : vector<2x16xf32>
    %822 = arith.addf %817, %818 : vector<2x16xf32>
    %823 = arith.addf %819, %820 : vector<2x16xf32>
    %824 = arith.addf %821, %822 : vector<2x16xf32>
    %825 = arith.addf %823, %824 : vector<2x16xf32>
    %826 = arith.addf %55, %825 : vector<2x16xf32>
    %827 = math.tanh %826 : vector<2x16xf32>
    %828 = vector.broadcast %3 : vector<1x16xf32> to vector<2x16xf32>
    %829 = arith.mulf %827, %828 : vector<2x16xf32>
    %cst_29 = arith.constant dense<0.000000e+00> : vector<2xf32>
    %830 = vector.multi_reduction <add>, %829, %cst_29 [1] : vector<2x16xf32> to vector<2xf32>
    %831 = vector.shape_cast %830 : vector<2xf32> to vector<2x1xf32>
    %832 = vector.broadcast %4 : vector<1x1xf32> to vector<2x1xf32>
    %833 = arith.addf %831, %832 : vector<2x1xf32>
    %c7_i32 = arith.constant 7 : i32
    %834 = vector.broadcast %c7_i32 : i32 to vector<1x8xi32>
    %835 = arith.cmpi eq, %72, %834 : vector<1x8xi32>
    %cst_30 = arith.constant 0.000000e+00 : f32
    %836 = vector.shape_cast %835 : vector<1x8xi1> to vector<1x8xi1>
    %837 = vector.broadcast %836 : vector<1x8xi1> to vector<2x8xi1>
    %838 = vector.shape_cast %833 : vector<2x1xf32> to vector<2x1xf32>
    %839 = vector.broadcast %838 : vector<2x1xf32> to vector<2x8xf32>
    %840 = vector.broadcast %cst_30 : f32 to vector<2x8xf32>
    %841 = arith.select %837, %839, %840 : vector<2x8xi1>, vector<2x8xf32>
    %842 = arith.addf %746, %841 : vector<2x8xf32>
    %c0_31 = arith.constant 0 : index
    %c0_32 = arith.constant 0 : index
    %843 = vector.load %arg8[%c0_31, %c0_32] : memref<2x8xf32, #tpu.memory_space<vmem>>, vector<2x8xf32>
    tpu.vector_store %arg8[%c0_31, %c0_32], %842 {strides = array<i32>} : memref<2x8xf32, #tpu.memory_space<vmem>>, vector<2x8xf32>,
    %c0_33 = arith.constant 0 : index
    %c0_34 = arith.constant 0 : index
    %844 = vector.load %arg9[%c0_33, %c0_34] : memref<2x16xf32, #tpu.memory_space<vmem>>, vector<2x16xf32>
    tpu.vector_store %arg9[%c0_33, %c0_34], %827 {strides = array<i32>} : memref<2x16xf32, #tpu.memory_space<vmem>>, vector<2x16xf32>,
    return
  }
}

</mosaic_0001>

<bundles_post_ra>
// kernel: net_forward.1
= control target key start
LH: loop header
LB: loop body
LE: loop exit
PB: predicated region body
PF: predicated region fallthrough
CT: control target
= control target key end

     0   :  { %s1807_s0 = inlined_call_operand.vmem [shape: f32[2,8], index: 0, kind: input, shape index: {}]   ;;  %s1808_s1 = inlined_call_operand.vmem [shape: f32[2,16], index: 1, kind: input, shape index: {}]   ;;  %s1809_s2 = inlined_call_operand.vmem [shape: f32[1,16], index: 2, kind: input, shape index: {}]   ;;  %s1810_s3 = inlined_call_operand.hbm [shape: f32[16,16], index: 3, kind: input, shape index: {}]   ;;  %s1811_s4 = inlined_call_operand.vmem [shape: f32[1,16], index: 4, kind: input, shape index: {}]   ;;  %s1812_s5 = inlined_call_operand.vmem [shape: f32[1,16], index: 5, kind: input, shape index: {}]   ;;  %s1813_s6 = inlined_call_operand.vmem [shape: f32[1,16], index: 6, kind: input, shape index: {}]   ;;  %s1814_s7 = inlined_call_operand.<no memory space> [shape: f32[1,1], index: 7, kind: input, shape index: {}]   ;;  %s1815_s8 = inlined_call_operand.vmem [shape: f32[2,8], index: 8, kind: output, shape index: {0}]   ;;  %s1816_s9 = inlined_call_operand.hbm [shape: f32[2,16], index: 9, kind: output, shape index: {1}]  }
   0x1   :  { %v15_v0 = vstv %s1814_s7 }
   0x2   :  { %16 = vst [vmem:[#allocation2] sm:$0x1] %v15_v0 }
   0x3   :  { %17 = vsyncpa [#allocation4], 0 }
   0x4   :  { %18 = vsyncpa [#allocation5], 0  ;;  %s29_s13 = sshll.u32 %s1810_s3, 4  ;;  %s1303_s14 = smov [#allocation3]   ;;  %s30_s13 = int_to_ptr.hbm [resolvable:$true] %s29_s13 }
   0x5   :  { %s31_s15 = sshll.u32 %s1303_s14, 4  ;;  %s1304_s16 = smov 128   ;;  %s32_s15 = int_to_ptr.vmem [resolvable:$true] %s31_s15 }
   0x6   :  { %s1305_s17 = smov 8  }
   0x7   :  { %37 = dma.hbm_to_vmem [thread:$0]  %s30_s13, 256, %s32_s15, [#allocation4], %s1304_s16, %s1304_s16, %s1305_s17  }
   0x8   :  { %1299 = dma.done.wait [#allocation4], 256  }
   0x9   :  { %1300 = vsyncadd [#allocation4], 4294967040  ;;  %v1847_v1 = vmov 2   ;;  %v1821_v2 = vmov 0   ;;  %v1845_v3 = vmov 4   ;;  %v1843_v6 = vmov 3  }
   0xa   :  { %1089 = vset.pattern.permute.xlu1 %v1847_v1  ;;  %1088 = vset.pattern.permute.xlu0 %v1821_v2  ;;  %v50_v4 = vld [vmem:[%s1807_s0] sm:$0x3]  ;;  %v1841_v7 = vmov 5   ;;  %v1839_v8 = vmov 6   ;;  %v1817_v9 = vmov 7   ;;  %v1819_v10 = vmov 1  }
   0xb   :  { %1091 = vset.pattern.permute.xlu2 %v1845_v3  ;;  %79 = vperm.xlu1 %1089, %v50_v4   ;;  %v116_v5 = vld [vmem:[%s1808_s1] sm:$0x3]  ;;  %v1827_v11 = vmov 10   ;;  %v1829_v12 = vmov 15   ;;  %v1835_v13 = vmov 8   ;;  %v1837_v14 = vmov 9  }
   0xc   :  { %61 = vperm.xlu0 %1088, %v50_v4   ;;  %91 = vperm.xlu2 %1091, %v50_v4   ;;  %v1833_v15 = vmov 11   ;;  %v1825_v16 = vmov 12   ;;  %v1831_v17 = vmov 13   ;;  %v1823_v18 = vmov 14   ;;  %v52_v38 = vld [vmem:[#allocation3] sm:$0xff]  ;;  %v53_v42 = vld [vmem:[#allocation3 + $0x8] sm:$0xff] }
   0xd   :  { %v1422_v39 = vperm.slane %v52_v38, 4  ;;  %v1424_v40 = vperm.slane %v52_v38, 7  ;;  %v1426_v41 = vperm.slane %v52_v38, 6  ;;  %v1428_v44 = vperm.slane %v52_v38, 3  ;;  %s1056_s30 = sshll.u32 %s1816_s9, 4  ;;  %s1057_s30 = int_to_ptr.hbm [resolvable:$true] %s1056_s30 }
   0xe   :  { %v1430_v45 = vperm.slane %v52_v38, 5  ;;  %v1432_v46 = vperm.slane %v53_v42, 2  ;;  %v1434_v47 = vperm.slane %v53_v42, 3  ;;  %v1436_v48 = vperm.slane %v53_v42, 6 }
   0xf   :  { %v1438_v49 = vperm.slane %v53_v42, 7  ;;  %v1440_v50 = vperm.slane %v52_v38, 2  ;;  %v1442_v51 = vperm.slane %v52_v38, 1  ;;  %v1444_v52 = vperm.slane %v52_v38, 0 }
  0x10   :  { %1869 = vst [vmem:[#allocation13_spill] sm:$0xff] %v1432_v46  ;;  %v1449_v58 = vperm.slane %v53_v42, 1  ;;  %v1451_v59 = vperm.slane %v53_v42, 0  ;;  %v1455_v62 = vperm.slane %v53_v42, 4  ;;  %vm235_vm0 = vcmask 123904  }
  0x11   :  { %1870 = vst [vmem:[#allocation14_spill] sm:$0xff] %v1438_v49  ;;  %vm1044_vm9 = vcmask 58368  }
  0x12   :  { %1871 = vst [vmem:[#allocation15_spill] sm:$0xff] %v1442_v51 }
  0x13   :  { %1090 = vset.pattern.permute.xlu1 %v1843_v6  ;;  %1872 = vst [vmem:[#allocation16_spill] sm:$0xff] %v1444_v52 }
  0x14   :  { %119 = vperm.xlu0 %1088, %v116_v5   ;;  %85 = vperm.xlu1 %1090, %v50_v4   ;;  %1873 = vst [vmem:[#allocation17_spill] sm:$0xff] %v1455_v62 }
  0x15   :  { %1092 = vset.pattern.permute.xlu2 %v1841_v7 }
  0x16   :  { %97 = vperm.xlu2 %1092, %v50_v4  }
  0x1c   :  { %1099 = vset.pattern.permute.xlu0 %v1841_v7  ;;  %1093 = vset.pattern.permute.xlu1 %v1839_v8 }
  0x1d   :  { %149 = vperm.xlu0 %1099, %v116_v5   ;;  %103 = vperm.xlu1 %1093, %v50_v4  }
  0x1e   :  { %1094 = vset.pattern.permute.xlu2 %v1817_v9 }
  0x1f   :  { %109 = vperm.xlu2 %1094, %v50_v4  }
  0x25   :  { %1095 = vset.pattern.permute.xlu1 %v1819_v10  ;;  %1104 = vset.pattern.permute.xlu0 %v1827_v11 }
  0x26   :  { %125 = vperm.xlu1 %1095, %v116_v5   ;;  %179 = vperm.xlu0 %1104, %v116_v5  }
  0x27   :  { %1096 = vset.pattern.permute.xlu2 %v1847_v1 }
  0x28   :  { %131 = vperm.xlu2 %1096, %v116_v5  }
  0x2e   :  { %1097 = vset.pattern.permute.xlu1 %v1843_v6  ;;  %1109 = vset.pattern.permute.xlu0 %v1829_v12 }
  0x2f   :  { %137 = vperm.xlu1 %1097, %v116_v5   ;;  %209 = vperm.xlu0 %1109, %v116_v5  }
  0x30   :  { %1098 = vset.pattern.permute.xlu2 %v1845_v3 }
  0x31   :  { %143 = vperm.xlu2 %1098, %v116_v5  }
  0x37   :  { %1100 = vset.pattern.permute.xlu1 %v1839_v8  ;;  %1110 = vset.pattern.permute.xlu0 %v1819_v10 }
  0x38   :  { %155 = vperm.xlu1 %1100, %v116_v5   ;;  %73 = vperm.xlu0 %1110, %v50_v4  }
  0x39   :  { %1101 = vset.pattern.permute.xlu2 %v1817_v9 }
  0x3a   :  { %161 = vperm.xlu2 %1101, %v116_v5  }
  0x40   :  { %1102 = vset.pattern.permute.xlu1 %v1835_v13 }
  0x41   :  { %167 = vperm.xlu1 %1102, %v116_v5  }
  0x42   :  { %1103 = vset.pattern.permute.xlu2 %v1837_v14 }
  0x43   :  { %173 = vperm.xlu2 %1103, %v116_v5  }
  0x49   :  { %1105 = vset.pattern.permute.xlu1 %v1833_v15 }
  0x4a   :  { %185 = vperm.xlu1 %1105, %v116_v5  }
  0x4b   :  { %1106 = vset.pattern.permute.xlu2 %v1825_v16  ;;  %v1479_v16 = vld [vmem:[%s1809_s2] ss:$0 sm:$0xff] }
  0x4c   :  { %191 = vperm.xlu2 %1106, %v116_v5  }
  0x52   :  { %1107 = vset.pattern.permute.xlu1 %v1831_v17 }
  0x53   :  { %197 = vperm.xlu1 %1107, %v116_v5  }
  0x54   :  { %1108 = vset.pattern.permute.xlu2 %v1823_v18 }
  0x55   :  { %203 = vperm.xlu2 %1108, %v116_v5   ;;  %v1460_v5 = vperm.slane %v53_v42, 5 }
  0x57   :  { %1874 = vst [vmem:[#allocation18_spill] sm:$0xff] %v1460_v5 }
  0x5b   :  { %1117 = vset.pattern.permute.xlu1 %v1817_v9 }
  0x5d   :  { %1111 = vset.pattern.permute.xlu2 %v1821_v2 }
  0x66   :  { %v1410_v19 = vpop.permute.xlu2 %91 }
  0x67   :  { %1865 = vst [vmem:[#allocation9_spill] sm:$0xff] %v1410_v19 }
  0x70   :  { %v1412_v20 = vpop.permute.xlu2 %97 }
  0x71   :  { %1866 = vst [vmem:[#allocation10_spill] sm:$0xff] %v1412_v20 }
  0x79   :  { %v1416_v22 = vpop.permute.xlu2 %109 }
  0x7a   :  { %1867 = vst [vmem:[#allocation11_spill] sm:$0xff] %v1416_v22 }
  0x7d   :  { %v1414_v21 = vpop.permute.xlu1 %79 }
  0x7e   :  { %v62_v28 = vpop.permute.xlu0 %61 }
  0x82   :  { %v132_v24 = vpop.permute.xlu2 %131 }
  0x86   :  { %v1418_v23 = vpop.permute.xlu1 %85  ;;  %v120_v31 = vpop.permute.xlu0 %119 }
  0x8b   :  { %v144_v26 = vpop.permute.xlu2 %143 }
  0x8c   :  { %v147_v53 = vmul.f32 %v1422_v39, %v144_v26 }
  0x8f   :  { %v1420_v25 = vpop.permute.xlu1 %103  ;;  %v150_v34 = vpop.permute.xlu0 %149 }
  0x90   :  { %1868 = vst [vmem:[#allocation12_spill] sm:$0xff] %v1420_v25  ;;  %v153_v61 = vmul.f32 %v1430_v45, %v150_v34  ;;  %v57_v34 = vld [vmem:[%s1812_s5] sm:$0x1] }
  0x94   :  { %v162_v30 = vpop.permute.xlu2 %161 }
  0x95   :  { %v165_v56 = vmul.f32 %v1424_v40, %v162_v30  ;;  %v135_v30 = vmul.f32 %v1440_v50, %v132_v24 }
  0x98   :  { %v126_v27 = vpop.permute.xlu1 %125  ;;  %v180_v37 = vpop.permute.xlu0 %179 }
  0x99   :  { %v183_v63 = vmul.f32 %v1432_v46, %v180_v37  ;;  %v129_v37 = vmul.f32 %v1442_v51, %v126_v27 }
  0x9d   :  { %v174_v33 = vpop.permute.xlu2 %173 }
  0x9e   :  { %v177_v42 = vmul.f32 %v1449_v58, %v174_v33 }
  0xa1   :  { %v138_v29 = vpop.permute.xlu1 %137  ;;  %v210_v55 = vpop.permute.xlu0 %209 }
  0xa2   :  { %v141_v60 = vmul.f32 %v1428_v44, %v138_v29  ;;  %v213_v26 = vmul.f32 %v1438_v49, %v210_v55  ;;  %v56_v29 = vld [vmem:[%s1811_s4] sm:$0x1]  ;;  %v216_v55 = vadd.f32 %v153_v61, %v147_v53 }
  0xa3   :  { %v58_v18 = vadd.f32 %v57_v34, %v56_v29 }
  0xa6   :  { %v192_v36 = vpop.permute.xlu2 %191 }
  0xaa   :  { %v156_v32 = vpop.permute.xlu1 %155 }
  0xab   :  { %v159_v57 = vmul.f32 %v1426_v41, %v156_v32  ;;  %v123_v32 = vmul.f32 %v1444_v52, %v120_v31  ;;  %v195_v31 = vmul.f32 %v1455_v62, %v192_v36  ;;  %v1482_v36 = vperm.slane %v58_v18, 0 }
  0xac   :  { %v1875_v18 = vmov 12  }
  0xad   :  { %v217_v38 = vadd.f32 %v165_v56, %v159_v57  ;;  %v214_v27 = vadd.f32 %v129_v37, %v123_v32  ;;  %v1877_v32 = vmov 0  }
  0xaf   :  { %v204_v54 = vpop.permute.xlu2 %203  ;;  %v223_v56 = vadd.f32 %v217_v38, %v216_v55 }
  0xb0   :  { %v207_v4 = vmul.f32 %v1436_v48, %v204_v54  ;;  %v215_v54 = vadd.f32 %v141_v60, %v135_v30 }
  0xb2   :  { %v221_v2 = vadd.f32 %v213_v26, %v207_v4  ;;  %v222_v53 = vadd.f32 %v215_v54, %v214_v27 }
  0xb3   :  { %v168_v35 = vpop.permute.xlu1 %167 }
  0xbc   :  { %v186_v43 = vpop.permute.xlu1 %185 }
  0xbd   :  { %v189_v0 = vmul.f32 %v1434_v47, %v186_v43  ;;  %v171_v43 = vmul.f32 %v1451_v59, %v168_v35  ;;  %v67_v35 = vmul.f32 %v1479_v16, %v62_v28  ;;  %v1876_v28 = vmov 14  }
  0xbf   :  { %v219_v9 = vadd.f32 %v189_v0, %v183_v63  ;;  %v218_v33 = vadd.f32 %v177_v42, %v171_v43  ;;  %v226_v63 = vadd.f32 %v223_v56, %v222_v53  ;;  %v71_v4 = vadd.f32 %v1482_v36, %v67_v35  ;;  %v74_v43 = vpop.permute.xlu0 %73  ;;  %v1508_v56 = vld [vmem:[#allocation2] ss:$0 sm:$0xff] }
  0xc0   :  { %1878 = vst [vmem:[#allocation19_spill] sm:$0xff] %v1508_v56 }
  0xc1   :  { %v224_v60 = vadd.f32 %v219_v9, %v218_v33 }
  0xc5   :  { %v198_v24 = vpop.permute.xlu1 %197 }
  0xc6   :  { %v201_v10 = vmul.f32 %v1460_v5, %v198_v24 }
  0xc8   :  { %v220_v57 = vadd.f32 %v201_v10, %v195_v31 }
  0xca   :  { %v225_v61 = vadd.f32 %v221_v2, %v220_v57  ;;  %v1498_v2 = vld [vmem:[%s1813_s6] ss:$0 sm:$0xff] }
  0xcc   :  { %v227_v0 = vadd.f32 %v225_v61, %v224_v60  ;;  %v1879_v61 = vmov 1  }
  0xce   :  { %v228_v26 = vadd.f32 %v227_v0, %v226_v63 }
  0xd0   :  { %v229_v30 = vadd.f32 %v228_v26, %v71_v4 }
  0xd2   :  { %1232 = vtanh.f32 %v229_v30 }
  0xd8   :  { %v1233_v29 = vpop.eup %1232 }
  0xd9   :  { %290 = vperm.xlu1 %1117, %v1233_v29   ;;  %260 = vperm.xlu0 %1110, %v1233_v29   ;;  %v234_v9 = vmul.f32 %v1233_v29, %v1498_v2 }
  0xda   :  { %255 = vperm.xlu2 %1111, %v1233_v29  }
  0xdb   :  { %v236_v10 = vsel %vm235_vm0, %v234_v9, 0.0 }
  0xe1   :  { %1123 = vset.pattern.permute.xlu1 %v1831_v17  ;;  %1114 = vset.pattern.permute.xlu0 %v1845_v3 }
  0xe2   :  { %1112 = vset.pattern.permute.xlu2 %v1847_v1  ;;  %320 = vperm.xlu1 %1123, %v1233_v29  }
  0xe3   :  { %275 = vperm.xlu0 %1114, %v1233_v29   ;;  %265 = vperm.xlu2 %1112, %v1233_v29  }
  0xea   :  { %1125 = vset.pattern.permute.xlu1 %v1829_v12 }
  0xeb   :  { %1118 = vset.pattern.permute.xlu0 %v1835_v13  ;;  %1113 = vset.pattern.permute.xlu2 %v1843_v6 }
  0xec   :  { %295 = vperm.xlu0 %1118, %v1233_v29   ;;  %270 = vperm.xlu2 %1113, %v1233_v29  }
  0xf4   :  { %1121 = vset.pattern.permute.xlu0 %v1833_v15  ;;  %1115 = vset.pattern.permute.xlu2 %v1841_v7 }
  0xf5   :  { %310 = vperm.xlu0 %1121, %v1233_v29   ;;  %280 = vperm.xlu2 %1115, %v1233_v29  }
  0xfd   :  { %1116 = vset.pattern.permute.xlu2 %v1839_v8  ;;  %1137 = vset.pattern.permute.xlu0 %v1827_v11 }
  0xfe   :  { %285 = vperm.xlu2 %1116, %v1233_v29  }
 0x106   :  { %1119 = vset.pattern.permute.xlu2 %v1837_v14 }
 0x107   :  { %300 = vperm.xlu2 %1119, %v1233_v29  }
 0x10c   :  { %237 = vadd.xlane.f32.xlu1 %v236_v10 }
 0x10f   :  { %1120 = vset.pattern.permute.xlu2 %v1827_v11 }
 0x110   :  { %305 = vperm.xlu2 %1120, %v1233_v29  }
 0x118   :  { %1122 = vset.pattern.permute.xlu2 %v1875_v18 }
 0x119   :  { %315 = vperm.xlu2 %1122, %v1233_v29  }
 0x121   :  { %1124 = vset.pattern.permute.xlu2 %v1876_v28 }
 0x122   :  { %325 = vperm.xlu2 %1124, %v1233_v29  }
 0x125   :  { %330 = vperm.xlu1 %1125, %v1233_v29  }
 0x12a   :  { %1126 = vset.pattern.permute.xlu2 %v1877_v32 }
 0x12d   :  { %1127 = vset.pattern.permute.xlu1 %v1877_v32 }
 0x134   :  { %v256_v34 = vpop.permute.xlu2 %255 }
 0x135   :  { %v258_v10 = vmul.f32 %v256_v34, %v1444_v52 }
 0x13d   :  { %v266_v37 = vpop.permute.xlu2 %265 }
 0x146   :  { %v271_v38 = vpop.permute.xlu2 %270 }
 0x14b   :  { %v291_v54 = vpop.permute.xlu1 %290  ;;  %v261_v24 = vpop.permute.xlu0 %260 }
 0x14c   :  { %v263_v4 = vmul.f32 %v261_v24, %v1442_v51  ;;  %v293_v29 = vmul.f32 %v291_v54, %v1424_v40 }
 0x14e   :  { %v334_v15 = vadd.f32 %v263_v4, %v258_v10 }
 0x14f   :  { %v281_v42 = vpop.permute.xlu2 %280 }
 0x154   :  { %v321_v31 = vpop.permute.xlu1 %320 }
 0x155   :  { %v276_v33 = vpop.permute.xlu0 %275  ;;  %v323_v54 = vmul.f32 %v321_v31, %v1460_v5 }
 0x156   :  { %v278_v26 = vmul.f32 %v276_v33, %v1422_v39  ;;  %v268_v33 = vmul.f32 %v266_v37, %v1440_v50 }
 0x158   :  { %v286_v55 = vpop.permute.xlu2 %285 }
 0x159   :  { %v288_v0 = vmul.f32 %v286_v55, %v1426_v41 }
 0x15b   :  { %v337_v12 = vadd.f32 %v293_v29, %v288_v0 }
 0x15e   :  { %v296_v60 = vpop.permute.xlu0 %295 }
 0x15f   :  { %v298_v34 = vmul.f32 %v296_v60, %v1451_v59 }
 0x161   :  { %v301_v27 = vpop.permute.xlu2 %300 }
 0x162   :  { %v303_v17 = vmul.f32 %v301_v27, %v1449_v58 }
 0x164   :  { %v338_v14 = vadd.f32 %v303_v17, %v298_v34 }
 0x167   :  { %v311_v30 = vpop.permute.xlu0 %310 }
 0x168   :  { %v313_v55 = vmul.f32 %v311_v30, %v1434_v47 }
 0x16a   :  { %v306_v53 = vpop.permute.xlu2 %305 }
 0x16b   :  { %v308_v9 = vmul.f32 %v306_v53, %v1432_v46 }
 0x173   :  { %v316_v63 = vpop.permute.xlu2 %315 }
 0x174   :  { %v318_v24 = vmul.f32 %v316_v63, %v1455_v62  ;;  %v76_v63 = vmul.f32 %v1479_v16, %v74_v43  ;;  %v1884_v43 = vmov 11  }
 0x176   :  { %v340_v30 = vadd.f32 %v323_v54, %v318_v24 }
 0x17c   :  { %v326_v11 = vpop.permute.xlu2 %325 }
 0x17f   :  { %v238_v57 = vpop.xlane.xlu1 %237 }
 0x180   :  { %v242_v35 = vadd.f32 %v1508_v56, %v238_v57  ;;  %v273_v57 = vmul.f32 %v271_v38, %v1428_v44  ;;  %v339_v38 = vadd.f32 %v313_v55, %v308_v9  ;;  %v1886_v55 = vmov 15  }
 0x182   :  { %248 = vperm.xlu2 %1126, %v242_v35   ;;  %v283_v35 = vmul.f32 %v281_v42, %v1430_v45  ;;  %v328_v42 = vmul.f32 %v326_v11, %v1436_v48  ;;  %v335_v29 = vadd.f32 %v273_v57, %v268_v33  ;;  %v344_v4 = vadd.f32 %v339_v38, %v338_v14 }
 0x183   :  { %v1883_v14 = vmov 8   ;;  %v1885_v57 = vmov 13  }
 0x184   :  { %v336_v53 = vadd.f32 %v283_v35, %v278_v26  ;;  %v342_v37 = vadd.f32 %v335_v29, %v334_v15  ;;  %v77_v35 = vadd.f32 %v76_v63, %v1482_v36 }
 0x186   :  { %v343_v27 = vadd.f32 %v337_v12, %v336_v53  ;;  %v1881_v12 = vmov 6  }
 0x188   :  { %v346_v31 = vadd.f32 %v343_v27, %v342_v37 }
 0x18a   :  { %1128 = vset.pattern.permute.xlu2 %v1879_v61 }
 0x197   :  { %v331_v13 = vpop.permute.xlu1 %330 }
 0x198   :  { %v333_v0 = vmul.f32 %v331_v13, %v1438_v49  ;;  %v1882_v13 = vmov 9  }
 0x19a   :  { %v341_v8 = vadd.f32 %v333_v0, %v328_v42 }
 0x19c   :  { %v345_v10 = vadd.f32 %v341_v8, %v340_v30  ;;  %v1880_v8 = vmov 7  }
 0x19e   :  { %v347_v26 = vadd.f32 %v345_v10, %v344_v4 }
 0x1a0   :  { %v348_v60 = vadd.f32 %v347_v26, %v346_v31 }
 0x1a2   :  { %v349_v9 = vadd.f32 %v348_v60, %v77_v35 }
 0x1a4   :  { %1234 = vtanh.f32 %v349_v9 }
 0x1aa   :  { %v1235_v11 = vpop.eup %1234 }
 0x1ab   :  { %418 = vperm.xlu0 %1137, %v1235_v11   ;;  %373 = vperm.xlu2 %1128, %v1235_v11   ;;  %v351_v15 = vmul.f32 %v1235_v11, %v1498_v2 }
 0x1ac   :  { %368 = vperm.xlu1 %1127, %v1235_v11  }
 0x1ad   :  { %v352_v17 = vsel %vm235_vm0, %v351_v15, 0.0 }
 0x1b3   :  { %1130 = vset.pattern.permute.xlu2 %v1843_v6  ;;  %1145 = vset.pattern.permute.xlu0 %v1879_v61 }
 0x1b4   :  { %1129 = vset.pattern.permute.xlu1 %v1847_v1  ;;  %383 = vperm.xlu2 %1130, %v1235_v11  }
 0x1b5   :  { %378 = vperm.xlu1 %1129, %v1235_v11  }
 0x1bc   :  { %1132 = vset.pattern.permute.xlu2 %v1841_v7 }
 0x1bd   :  { %1131 = vset.pattern.permute.xlu1 %v1845_v3  ;;  %393 = vperm.xlu2 %1132, %v1235_v11  }
 0x1be   :  { %388 = vperm.xlu1 %1131, %v1235_v11  }
 0x1c5   :  { %1134 = vset.pattern.permute.xlu2 %v1880_v8 }
 0x1c6   :  { %1133 = vset.pattern.permute.xlu1 %v1881_v12  ;;  %403 = vperm.xlu2 %1134, %v1235_v11  }
 0x1c7   :  { %398 = vperm.xlu1 %1133, %v1235_v11  }
 0x1ce   :  { %1136 = vset.pattern.permute.xlu2 %v1882_v13 }
 0x1cf   :  { %1135 = vset.pattern.permute.xlu1 %v1883_v14  ;;  %413 = vperm.xlu2 %1136, %v1235_v11  }
 0x1d0   :  { %408 = vperm.xlu1 %1135, %v1235_v11  }
 0x1d5   :  { %353 = vadd.xlane.f32.xlu0 %v352_v17 }
 0x1d7   :  { %1139 = vset.pattern.permute.xlu2 %v1875_v18 }
 0x1d8   :  { %1138 = vset.pattern.permute.xlu1 %v1884_v43  ;;  %428 = vperm.xlu2 %1139, %v1235_v11  }
 0x1d9   :  { %423 = vperm.xlu1 %1138, %v1235_v11  }
 0x1dc   :  { %v1548_v24 = vpop.permute.xlu2 %248 }
 0x1e0   :  { %1141 = vset.pattern.permute.xlu2 %v1876_v28 }
 0x1e1   :  { %1140 = vset.pattern.permute.xlu1 %v1885_v57  ;;  %438 = vperm.xlu2 %1141, %v1235_v11  }
 0x1e2   :  { %433 = vperm.xlu1 %1140, %v1235_v11  }
 0x1e9   :  { %1143 = vset.pattern.permute.xlu2 %v1877_v32 }
 0x1ea   :  { %1142 = vset.pattern.permute.xlu1 %v1886_v55 }
 0x1eb   :  { %443 = vperm.xlu1 %1142, %v1235_v11  }
 0x1f3   :  { %1144 = vset.pattern.permute.xlu1 %v1877_v32 }
 0x205   :  { %v374_v54 = vpop.permute.xlu2 %373 }
 0x20e   :  { %v384_v34 = vpop.permute.xlu2 %383 }
 0x20f   :  { %v386_v17 = vmul.f32 %v384_v34, %v1428_v44 }
 0x217   :  { %v394_v42 = vpop.permute.xlu2 %393 }
 0x21d   :  { %v419_v27 = vpop.permute.xlu0 %418 }
 0x21e   :  { %v369_v33 = vpop.permute.xlu1 %368  ;;  %v421_v6 = vmul.f32 %v419_v27, %v1432_v46 }
 0x220   :  { %v404_v29 = vpop.permute.xlu2 %403 }
 0x221   :  { %v406_v11 = vmul.f32 %v404_v29, %v1424_v40 }
 0x227   :  { %v379_v53 = vpop.permute.xlu1 %378 }
 0x228   :  { %v381_v60 = vmul.f32 %v379_v53, %v1440_v50 }
 0x229   :  { %v414_v63 = vpop.permute.xlu2 %413 }
 0x22a   :  { %v448_v1 = vadd.f32 %v386_v17, %v381_v60  ;;  %v416_v29 = vmul.f32 %v414_v63, %v1449_v58 }
 0x230   :  { %v389_v38 = vpop.permute.xlu1 %388 }
 0x231   :  { %v391_v9 = vmul.f32 %v389_v38, %v1422_v39  ;;  %v376_v38 = vmul.f32 %v374_v54, %v1442_v51  ;;  %v82_v54 = vmul.f32 %v1479_v16, %v1414_v21  ;;  %v114_v21 = vlaneseq }
 0x232   :  { %v429_v31 = vpop.permute.xlu2 %428 }
 0x233   :  { %v431_v34 = vmul.f32 %v429_v31, %v1455_v62  ;;  %v83_v31 = vadd.f32 %v82_v54, %v1482_v36 }
 0x239   :  { %v399_v0 = vpop.permute.xlu1 %398 }
 0x23a   :  { %v401_v35 = vmul.f32 %v399_v0, %v1426_v41 }
 0x23b   :  { %v439_v7 = vpop.permute.xlu2 %438 }
 0x23c   :  { %v450_v3 = vadd.f32 %v406_v11, %v401_v35 }
 0x242   :  { %v409_v30 = vpop.permute.xlu1 %408 }
 0x243   :  { %v411_v0 = vmul.f32 %v409_v30, %v1451_v59 }
 0x245   :  { %v451_v11 = vadd.f32 %v416_v29, %v411_v0 }
 0x248   :  { %v354_v37 = vpop.xlane.xlu0 %353 }
 0x249   :  { %v355_v4 = vadd.f32 %v1508_v56, %v354_v37  ;;  %v396_v37 = vmul.f32 %v394_v42, %v1430_v45  ;;  %v441_v42 = vmul.f32 %v439_v7, %v1436_v48 }
 0x24b   :  { %v424_v10 = vpop.permute.xlu1 %423  ;;  %361 = vperm.xlu2 %1143, %v355_v4   ;;  %v371_v4 = vmul.f32 %v369_v33, %v1444_v52 }
 0x24c   :  { %v426_v15 = vmul.f32 %v424_v10, %v1434_v47  ;;  %v449_v10 = vadd.f32 %v396_v37, %v391_v9 }
 0x24d   :  { %v447_v27 = vadd.f32 %v376_v38, %v371_v4 }
 0x24e   :  { %v452_v33 = vadd.f32 %v426_v15, %v421_v6  ;;  %v456_v35 = vadd.f32 %v450_v3, %v449_v10  ;;  %v1887_v3 = vmov 2  }
 0x250   :  { %v457_v60 = vadd.f32 %v452_v33, %v451_v11 }
 0x253   :  { %1150 = vset.pattern.permute.xlu2 %v1881_v12 }
 0x254   :  { %v434_v26 = vpop.permute.xlu1 %433 }
 0x255   :  { %v436_v53 = vmul.f32 %v434_v26, %v1460_v5  ;;  %v455_v26 = vadd.f32 %v448_v1, %v447_v27  ;;  %v1889_v1 = vmov 3  }
 0x257   :  { %v453_v30 = vadd.f32 %v436_v53, %v431_v34  ;;  %v459_v9 = vadd.f32 %v456_v35, %v455_v26  ;;  %v1891_v53 = vmov 10  }
 0x25d   :  { %v444_v22 = vpop.permute.xlu1 %443 }
 0x25e   :  { %v446_v25 = vmul.f32 %v444_v22, %v1438_v49  ;;  %v1888_v22 = vmov 4  }
 0x260   :  { %v454_v20 = vadd.f32 %v446_v25, %v441_v42  ;;  %v1583_v25 = vand.u32 127, %v114_v21 }
 0x262   :  { %v458_v63 = vadd.f32 %v454_v20, %v453_v30  ;;  %v1890_v20 = vmov 5   ;;  %vm243_vm1 = vcmp.eq.s32.totalorder %v1583_v25, 0  ;;  %vm356_vm2 = vcmp.eq.s32.totalorder %v1583_v25, 1 }
 0x263   :  { %v251_v4 = vsel %vm243_vm1, %v1548_v24, 0.0  ;;  %vm469_vm3 = vcmp.eq.s32.totalorder %v1583_v25, 2  ;;  %vm582_vm4 = vcmp.eq.s32.totalorder %v1583_v25, 3  ;;  %vm695_vm5 = vcmp.eq.s32.totalorder %v1583_v25, 4 }
 0x264   :  { %v460_v17 = vadd.f32 %v458_v63, %v457_v60  ;;  %vm808_vm6 = vcmp.eq.s32.totalorder %v1583_v25, 5  ;;  %vm921_vm7 = vcmp.eq.s32.totalorder %v1583_v25, 6  ;;  %vm1034_vm8 = vcmp.eq.s32.totalorder %v1583_v25, 7 }
 0x266   :  { %v461_v37 = vadd.f32 %v460_v17, %v459_v9 }
 0x268   :  { %v462_v7 = vadd.f32 %v461_v37, %v83_v31 }
 0x26a   :  { %1236 = vtanh.f32 %v462_v7 }
 0x270   :  { %v1237_v6 = vpop.eup %1236 }
 0x271   :  { %481 = vperm.xlu1 %1144, %v1237_v6   ;;  %486 = vperm.xlu0 %1145, %v1237_v6   ;;  %v464_v29 = vmul.f32 %v1237_v6, %v1498_v2 }
 0x272   :  { %511 = vperm.xlu2 %1150, %v1237_v6  }
 0x273   :  { %v465_v10 = vsel %vm235_vm0, %v464_v29, 0.0 }
 0x279   :  { %1146 = vset.pattern.permute.xlu1 %v1887_v3  ;;  %1148 = vset.pattern.permute.xlu0 %v1888_v22 }
 0x27a   :  { %1155 = vset.pattern.permute.xlu2 %v1884_v43  ;;  %491 = vperm.xlu1 %1146, %v1237_v6  }
 0x27b   :  { %501 = vperm.xlu0 %1148, %v1237_v6   ;;  %536 = vperm.xlu2 %1155, %v1237_v6  }
 0x282   :  { %1147 = vset.pattern.permute.xlu1 %v1889_v1 }
 0x283   :  { %1152 = vset.pattern.permute.xlu0 %v1883_v14  ;;  %1158 = vset.pattern.permute.xlu2 %v1876_v28 }
 0x284   :  { %496 = vperm.xlu1 %1147, %v1237_v6   ;;  %521 = vperm.xlu0 %1152, %v1237_v6  }
 0x285   :  { %551 = vperm.xlu2 %1158, %v1237_v6  }
 0x28c   :  { %1149 = vset.pattern.permute.xlu1 %v1890_v20  ;;  %1156 = vset.pattern.permute.xlu0 %v1875_v18 }
 0x28d   :  { %506 = vperm.xlu1 %1149, %v1237_v6   ;;  %541 = vperm.xlu0 %1156, %v1237_v6  }
 0x28e   :  { %1167 = vset.pattern.permute.xlu2 %v1880_v8 }
 0x295   :  { %1151 = vset.pattern.permute.xlu1 %v1880_v8  ;;  %1162 = vset.pattern.permute.xlu0 %v1887_v3 }
 0x296   :  { %516 = vperm.xlu1 %1151, %v1237_v6  }
 0x29e   :  { %1153 = vset.pattern.permute.xlu1 %v1882_v13 }
 0x29f   :  { %526 = vperm.xlu1 %1153, %v1237_v6  }
 0x2a5   :  { %v362_v15 = vpop.permute.xlu2 %361 }
 0x2a6   :  { %v364_v0 = vsel %vm356_vm2, %v362_v15, 0.0 }
 0x2a7   :  { %1154 = vset.pattern.permute.xlu1 %v1891_v53  ;;  %v1589_v38 = vadd.f32 %v364_v0, %v251_v4 }
 0x2a8   :  { %531 = vperm.xlu1 %1154, %v1237_v6  }
 0x2ae   :  { %466 = vadd.xlane.f32.xlu2 %v465_v10 }
 0x2b0   :  { %1157 = vset.pattern.permute.xlu1 %v1885_v57 }
 0x2b1   :  { %546 = vperm.xlu1 %1157, %v1237_v6  }
 0x2b9   :  { %1159 = vset.pattern.permute.xlu1 %v1886_v55 }
 0x2ba   :  { %556 = vperm.xlu1 %1159, %v1237_v6  }
 0x2c2   :  { %1160 = vset.pattern.permute.xlu1 %v1877_v32 }
 0x2cc   :  { %v512_v27 = vpop.permute.xlu2 %511 }
 0x2cd   :  { %v514_v21 = vmul.f32 %v512_v27, %v1426_v41 }
 0x2d5   :  { %v537_v30 = vpop.permute.xlu2 %536 }
 0x2d6   :  { %v539_v0 = vmul.f32 %v537_v30, %v1434_v47 }
 0x2df   :  { %v552_v60 = vpop.permute.xlu2 %551 }
 0x2e3   :  { %v482_v24 = vpop.permute.xlu1 %481  ;;  %v487_v11 = vpop.permute.xlu0 %486 }
 0x2e4   :  { %v484_v29 = vmul.f32 %v482_v24, %v1444_v52  ;;  %v489_v10 = vmul.f32 %v487_v11, %v1442_v51 }
 0x2e6   :  { %v560_v52 = vadd.f32 %v489_v10, %v484_v29 }
 0x2ec   :  { %v492_v34 = vpop.permute.xlu1 %491 }
 0x2ed   :  { %v502_v26 = vpop.permute.xlu0 %501 }
 0x2f6   :  { %v497_v42 = vpop.permute.xlu1 %496  ;;  %v522_v9 = vpop.permute.xlu0 %521 }
 0x2f7   :  { %v499_v6 = vmul.f32 %v497_v42, %v1428_v44 }
 0x2ff   :  { %v507_v33 = vpop.permute.xlu1 %506  ;;  %v542_v19 = vpop.permute.xlu0 %541 }
 0x300   :  { %v509_v15 = vmul.f32 %v507_v33, %v1430_v45  ;;  %v554_v33 = vmul.f32 %v552_v60, %v1436_v48  ;;  %v544_v24 = vmul.f32 %v542_v19, %v1455_v62 }
 0x308   :  { %v517_v35 = vpop.permute.xlu1 %516 }
 0x309   :  { %v519_v7 = vmul.f32 %v517_v35, %v1424_v40 }
 0x30b   :  { %v563_v35 = vadd.f32 %v519_v7, %v514_v21 }
 0x311   :  { %v527_v54 = vpop.permute.xlu1 %526 }
 0x312   :  { %v529_v42 = vmul.f32 %v527_v54, %v1449_v58  ;;  %v88_v54 = vmul.f32 %v1479_v16, %v1418_v23 }
 0x31a   :  { %v532_v63 = vpop.permute.xlu1 %531 }
 0x31b   :  { %v534_v4 = vmul.f32 %v532_v63, %v1432_v46  ;;  %v524_v63 = vmul.f32 %v522_v9, %v1451_v59 }
 0x31d   :  { %v565_v11 = vadd.f32 %v539_v0, %v534_v4 }
 0x321   :  { %v467_v17 = vpop.xlane.xlu2 %466 }
 0x322   :  { %v468_v31 = vadd.f32 %v1508_v56, %v467_v17  ;;  %v494_v17 = vmul.f32 %v492_v34, %v1440_v50 }
 0x323   :  { %v547_v37 = vpop.permute.xlu1 %546 }
 0x324   :  { %474 = vperm.xlu1 %1160, %v468_v31   ;;  %v504_v31 = vmul.f32 %v502_v26, %v1422_v39  ;;  %v549_v27 = vmul.f32 %v547_v37, %v1460_v5  ;;  %v561_v3 = vadd.f32 %v499_v6, %v494_v17  ;;  %v564_v26 = vadd.f32 %v529_v42, %v524_v63 }
 0x326   :  { %v562_v46 = vadd.f32 %v509_v15, %v504_v31  ;;  %v566_v7 = vadd.f32 %v549_v27, %v544_v24  ;;  %v568_v37 = vadd.f32 %v561_v3, %v560_v52  ;;  %v570_v60 = vadd.f32 %v565_v11, %v564_v26 }
 0x327   :  { %v89_v15 = vadd.f32 %v88_v54, %v1482_v36 }
 0x328   :  { %v569_v51 = vadd.f32 %v563_v35, %v562_v46 }
 0x32a   :  { %v572_v17 = vadd.f32 %v569_v51, %v568_v37 }
 0x32c   :  { %v557_v30 = vpop.permute.xlu1 %556 }
 0x32d   :  { %v559_v34 = vmul.f32 %v557_v30, %v1438_v49 }
 0x32f   :  { %v567_v21 = vadd.f32 %v559_v34, %v554_v33 }
 0x331   :  { %v571_v6 = vadd.f32 %v567_v21, %v566_v7 }
 0x333   :  { %v573_v9 = vadd.f32 %v571_v6, %v570_v60 }
 0x335   :  { %v574_v31 = vadd.f32 %v573_v9, %v572_v17 }
 0x337   :  { %v575_v19 = vadd.f32 %v574_v31, %v89_v15 }
 0x339   :  { %1238 = vtanh.f32 %v575_v19  ;;  %v1892_v19 = vld [vmem:[#allocation15_spill] sm:$0xff] }
 0x33f   :  { %v1239_v4 = vpop.eup %1238 }
 0x340   :  { %629 = vperm.xlu2 %1167, %v1239_v4   ;;  %604 = vperm.xlu0 %1162, %v1239_v4   ;;  %v577_v23 = vmul.f32 %v1239_v4, %v1498_v2 }
 0x341   :  { %594 = vperm.xlu1 %1160, %v1239_v4  }
 0x342   :  { %v578_v46 = vsel %vm235_vm0, %v577_v23, 0.0  ;;  %v1893_v23 = vmov 2  }
 0x348   :  { %1173 = vset.pattern.permute.xlu2 %v1885_v57  ;;  %1165 = vset.pattern.permute.xlu0 %v1890_v20 }
 0x349   :  { %1161 = vset.pattern.permute.xlu1 %v1879_v61  ;;  %659 = vperm.xlu2 %1173, %v1239_v4  }
 0x34a   :  { %619 = vperm.xlu0 %1165, %v1239_v4   ;;  %599 = vperm.xlu1 %1161, %v1239_v4  }
 0x351   :  { %1175 = vset.pattern.permute.xlu2 %v1886_v55 }
 0x352   :  { %1169 = vset.pattern.permute.xlu0 %v1882_v13  ;;  %1163 = vset.pattern.permute.xlu1 %v1889_v1 }
 0x353   :  { %669 = vperm.xlu2 %1175, %v1239_v4   ;;  %639 = vperm.xlu0 %1169, %v1239_v4  }
 0x354   :  { %609 = vperm.xlu1 %1163, %v1239_v4  }
 0x35b   :  { %1172 = vset.pattern.permute.xlu0 %v1875_v18  ;;  %1177 = vset.pattern.permute.xlu2 %v1877_v32 }
 0x35c   :  { %1164 = vset.pattern.permute.xlu1 %v1888_v22  ;;  %654 = vperm.xlu0 %1172, %v1239_v4  }
 0x35d   :  { %614 = vperm.xlu1 %1164, %v1239_v4  }
 0x364   :  { %1176 = vset.pattern.permute.xlu0 %v1877_v32 }
 0x365   :  { %1166 = vset.pattern.permute.xlu1 %v1881_v12 }
 0x366   :  { %624 = vperm.xlu1 %1166, %v1239_v4  }
 0x36e   :  { %1168 = vset.pattern.permute.xlu1 %v1883_v14 }
 0x36f   :  { %634 = vperm.xlu1 %1168, %v1239_v4  }
 0x377   :  { %1170 = vset.pattern.permute.xlu1 %v1891_v53 }
 0x378   :  { %644 = vperm.xlu1 %1170, %v1239_v4  }
 0x37c   :  { %579 = vadd.xlane.f32.xlu2 %v578_v46 }
 0x380   :  { %1171 = vset.pattern.permute.xlu1 %v1884_v43 }
 0x381   :  { %649 = vperm.xlu1 %1171, %v1239_v4  }
 0x389   :  { %1174 = vset.pattern.permute.xlu1 %v1876_v28 }
 0x38a   :  { %664 = vperm.xlu1 %1174, %v1239_v4  }
 0x392   :  { %1184 = vset.pattern.permute.xlu1 %v1880_v8 }
 0x396   :  { %v475_v51 = vpop.permute.xlu1 %474 }
 0x397   :  { %v477_v52 = vsel %vm469_vm3, %v475_v51, 0.0 }
 0x398   :  { %v1636_v3 = vadd.f32 %v477_v52, %v1589_v38 }
 0x39a   :  { %v630_v42 = vpop.permute.xlu2 %629 }
 0x39b   :  { %v632_v60 = vmul.f32 %v630_v42, %v1424_v40  ;;  %v1894_v42 = vld [vmem:[#allocation13_spill] sm:$0xff] }
 0x3a3   :  { %v660_v63 = vpop.permute.xlu2 %659 }
 0x3ad   :  { %v670_v11 = vpop.permute.xlu2 %669 }
 0x3b2   :  { %v605_v33 = vpop.permute.xlu0 %604 }
 0x3b3   :  { %v595_v0 = vpop.permute.xlu1 %594  ;;  %v607_v15 = vmul.f32 %v605_v33, %v1440_v50 }
 0x3bc   :  { %v600_v29 = vpop.permute.xlu1 %599  ;;  %v620_v24 = vpop.permute.xlu0 %619 }
 0x3bd   :  { %v622_v31 = vmul.f32 %v620_v24, %v1430_v45  ;;  %v602_v4 = vmul.f32 %v600_v29, %v1892_v19 }
 0x3c5   :  { %v640_v26 = vpop.permute.xlu0 %639 }
 0x3c6   :  { %v610_v10 = vpop.permute.xlu1 %609  ;;  %v642_v33 = vmul.f32 %v640_v26, %v1449_v58 }
 0x3c7   :  { %v612_v6 = vmul.f32 %v610_v10, %v1428_v44  ;;  %v662_v10 = vmul.f32 %v660_v63, %v1460_v5 }
 0x3ce   :  { %v655_v37 = vpop.permute.xlu0 %654 }
 0x3cf   :  { %v615_v35 = vpop.permute.xlu1 %614  ;;  %v657_v46 = vmul.f32 %v655_v37, %v1455_v62 }
 0x3d0   :  { %v617_v17 = vmul.f32 %v615_v35, %v1422_v39  ;;  %v672_v35 = vmul.f32 %v670_v11, %v1438_v49 }
 0x3d2   :  { %v675_v29 = vadd.f32 %v622_v31, %v617_v17 }
 0x3d8   :  { %v625_v27 = vpop.permute.xlu1 %624 }
 0x3d9   :  { %v627_v38 = vmul.f32 %v625_v27, %v1426_v41 }
 0x3db   :  { %v676_v51 = vadd.f32 %v632_v60, %v627_v38  ;;  %v679_v38 = vadd.f32 %v662_v10, %v657_v46 }
 0x3dd   :  { %v682_v60 = vadd.f32 %v676_v51, %v675_v29 }
 0x3e1   :  { %v635_v30 = vpop.permute.xlu1 %634 }
 0x3e2   :  { %v637_v52 = vmul.f32 %v635_v30, %v1451_v59 }
 0x3e4   :  { %v677_v30 = vadd.f32 %v642_v33, %v637_v52 }
 0x3ea   :  { %v645_v34 = vpop.permute.xlu1 %644 }
 0x3eb   :  { %v647_v27 = vmul.f32 %v645_v34, %v1894_v42  ;;  %v1896_v34 = vld [vmem:[#allocation9_spill] sm:$0xff] }
 0x3ec   :  { %v94_v63 = vmul.f32 %v1479_v16, %v1896_v34 }
 0x3ee   :  { %v95_v26 = vadd.f32 %v94_v63, %v1482_v36 }
 0x3ef   :  { %v580_v7 = vpop.xlane.xlu2 %579 }
 0x3f0   :  { %v581_v21 = vadd.f32 %v1508_v56, %v580_v7  ;;  %v1895_v7 = vld [vmem:[#allocation16_spill] sm:$0xff] }
 0x3f2   :  { %587 = vperm.xlu0 %1176, %v581_v21   ;;  %v597_v21 = vmul.f32 %v595_v0, %v1895_v7 }
 0x3f3   :  { %v650_v54 = vpop.permute.xlu1 %649 }
 0x3f4   :  { %v652_v9 = vmul.f32 %v650_v54, %v1434_v47  ;;  %v674_v54 = vadd.f32 %v612_v6, %v607_v15  ;;  %v673_v37 = vadd.f32 %v602_v4, %v597_v21 }
 0x3f6   :  { %v678_v56 = vadd.f32 %v652_v9, %v647_v27  ;;  %v681_v42 = vadd.f32 %v674_v54, %v673_v37 }
 0x3f8   :  { %v683_v11 = vadd.f32 %v678_v56, %v677_v30  ;;  %v685_v0 = vadd.f32 %v682_v60, %v681_v42 }
 0x3fa   :  { %1179 = vset.pattern.permute.xlu0 %v1893_v23 }
 0x3fc   :  { %v665_v24 = vpop.permute.xlu1 %664 }
 0x3fd   :  { %v667_v23 = vmul.f32 %v665_v24, %v1436_v48 }
 0x3ff   :  { %v680_v62 = vadd.f32 %v672_v35, %v667_v23 }
 0x401   :  { %v684_v49 = vadd.f32 %v680_v62, %v679_v38 }
 0x403   :  { %v686_v7 = vadd.f32 %v684_v49, %v683_v11 }
 0x405   :  { %v687_v6 = vadd.f32 %v686_v7, %v685_v0 }
 0x407   :  { %v688_v17 = vadd.f32 %v687_v6, %v95_v26 }
 0x409   :  { %1240 = vtanh.f32 %v688_v17  ;;  %v1897_v17 = vld [vmem:[#allocation13_spill] sm:$0xff] }
 0x40f   :  { %v1241_v9 = vpop.eup %1240 }
 0x410   :  { %742 = vperm.xlu1 %1184, %v1241_v9   ;;  %707 = vperm.xlu2 %1177, %v1241_v9   ;;  %v690_v49 = vmul.f32 %v1241_v9, %v1498_v2 }
 0x411   :  { %717 = vperm.xlu0 %1179, %v1241_v9  }
 0x412   :  { %v691_v62 = vsel %vm235_vm0, %v690_v49, 0.0  ;;  %v1898_v49 = vld [vmem:[#allocation16_spill] sm:$0xff] }
 0x418   :  { %1189 = vset.pattern.permute.xlu1 %v1875_v18  ;;  %1178 = vset.pattern.permute.xlu2 %v1879_v61 }
 0x419   :  { %1182 = vset.pattern.permute.xlu0 %v1890_v20  ;;  %767 = vperm.xlu1 %1189, %v1241_v9  }
 0x41a   :  { %712 = vperm.xlu2 %1178, %v1241_v9   ;;  %732 = vperm.xlu0 %1182, %v1241_v9  }
 0x421   :  { %1192 = vset.pattern.permute.xlu1 %v1886_v55 }
 0x422   :  { %1180 = vset.pattern.permute.xlu2 %v1889_v1  ;;  %1186 = vset.pattern.permute.xlu0 %v1882_v13 }
 0x423   :  { %782 = vperm.xlu1 %1192, %v1241_v9   ;;  %722 = vperm.xlu2 %1180, %v1241_v9  }
 0x424   :  { %752 = vperm.xlu0 %1186, %v1241_v9  }
 0x42b   :  { %1181 = vset.pattern.permute.xlu2 %v1888_v22  ;;  %1194 = vset.pattern.permute.xlu1 %v1879_v61 }
 0x42c   :  { %1190 = vset.pattern.permute.xlu0 %v1885_v57  ;;  %727 = vperm.xlu2 %1181, %v1241_v9  }
 0x42d   :  { %772 = vperm.xlu0 %1190, %v1241_v9  }
 0x434   :  { %1183 = vset.pattern.permute.xlu2 %v1881_v12 }
 0x435   :  { %737 = vperm.xlu2 %1183, %v1241_v9   ;;  %1193 = vset.pattern.permute.xlu0 %v1877_v32 }
 0x43d   :  { %1185 = vset.pattern.permute.xlu2 %v1883_v14 }
 0x43e   :  { %747 = vperm.xlu2 %1185, %v1241_v9  }
 0x446   :  { %1187 = vset.pattern.permute.xlu2 %v1891_v53 }
 0x447   :  { %757 = vperm.xlu2 %1187, %v1241_v9  }
 0x44d   :  { %692 = vadd.xlane.f32.xlu1 %v691_v62 }
 0x44f   :  { %1188 = vset.pattern.permute.xlu2 %v1884_v43 }
 0x450   :  { %762 = vperm.xlu2 %1188, %v1241_v9  }
 0x458   :  { %1191 = vset.pattern.permute.xlu2 %v1876_v28 }
 0x459   :  { %777 = vperm.xlu2 %1191, %v1241_v9  }
 0x461   :  { %1200 = vset.pattern.permute.xlu2 %v1880_v8 }
 0x464   :  { %v588_v56 = vpop.permute.xlu0 %587 }
 0x465   :  { %v590_v15 = vsel %vm582_vm4, %v588_v56, 0.0 }
 0x466   :  { %v1679_v31 = vadd.f32 %v590_v15, %v1636_v3  ;;  %v1899_v15 = vld [vmem:[#allocation17_spill] sm:$0xff] }
 0x46a   :  { %v708_v4 = vpop.permute.xlu2 %707 }
 0x46b   :  { %v710_v62 = vmul.f32 %v708_v4, %v1898_v49 }
 0x474   :  { %v713_v23 = vpop.permute.xlu2 %712 }
 0x475   :  { %v715_v30 = vmul.f32 %v713_v23, %v1892_v19  ;;  %v1900_v23 = vld [vmem:[#allocation14_spill] sm:$0xff] }
 0x47d   :  { %v723_v46 = vpop.permute.xlu2 %722 }
 0x47e   :  { %v725_v34 = vmul.f32 %v723_v46, %v1428_v44 }
 0x482   :  { %v743_v35 = vpop.permute.xlu1 %742 }
 0x483   :  { %v718_v42 = vpop.permute.xlu0 %717  ;;  %v745_v38 = vmul.f32 %v743_v35, %v1424_v40 }
 0x484   :  { %v720_v29 = vmul.f32 %v718_v42, %v1440_v50 }
 0x486   :  { %v728_v51 = vpop.permute.xlu2 %727  ;;  %v787_v56 = vadd.f32 %v725_v34, %v720_v29 }
 0x487   :  { %v730_v63 = vmul.f32 %v728_v51, %v1422_v39 }
 0x48b   :  { %v768_v33 = vpop.permute.xlu1 %767 }
 0x48c   :  { %v733_v10 = vpop.permute.xlu0 %732 }
 0x48d   :  { %v735_v3 = vmul.f32 %v733_v10, %v1430_v45 }
 0x48f   :  { %v738_v52 = vpop.permute.xlu2 %737  ;;  %v788_v42 = vadd.f32 %v735_v3, %v730_v63 }
 0x490   :  { %v740_v54 = vmul.f32 %v738_v52, %v1426_v41  ;;  %v770_v52 = vmul.f32 %v768_v33, %v1899_v15 }
 0x492   :  { %v789_v0 = vadd.f32 %v745_v38, %v740_v54  ;;  %v786_v54 = vadd.f32 %v715_v30, %v710_v62 }
 0x494   :  { %v794_v29 = vadd.f32 %v787_v56, %v786_v54 }
 0x495   :  { %v783_v11 = vpop.permute.xlu1 %782 }
 0x496   :  { %v753_v21 = vpop.permute.xlu0 %752  ;;  %v785_v35 = vmul.f32 %v783_v11, %v1900_v23 }
 0x497   :  { %v755_v46 = vmul.f32 %v753_v21, %v1449_v58 }
 0x498   :  { %v748_v27 = vpop.permute.xlu2 %747 }
 0x499   :  { %v750_v26 = vmul.f32 %v748_v27, %v1451_v59  ;;  %v795_v27 = vadd.f32 %v789_v0, %v788_v42 }
 0x49b   :  { %v790_v38 = vadd.f32 %v755_v46, %v750_v26  ;;  %v798_v3 = vadd.f32 %v795_v27, %v794_v29 }
 0x49f   :  { %v773_v37 = vpop.permute.xlu0 %772 }
 0x4a0   :  { %v775_v6 = vmul.f32 %v773_v37, %v1460_v5 }
 0x4a1   :  { %v758_v7 = vpop.permute.xlu2 %757 }
 0x4a2   :  { %v760_v9 = vmul.f32 %v758_v7, %v1897_v17  ;;  %v792_v37 = vadd.f32 %v775_v6, %v770_v52  ;;  %v1901_v7 = vld [vmem:[#allocation10_spill] sm:$0xff] }
 0x4a3   :  { %v100_v4 = vmul.f32 %v1479_v16, %v1901_v7  ;;  %v1903_v16 = vmov 2  }
 0x4a5   :  { %v101_v11 = vadd.f32 %v100_v4, %v1482_v36 }
 0x4aa   :  { %v763_v24 = vpop.permute.xlu2 %762 }
 0x4ab   :  { %v765_v60 = vmul.f32 %v763_v24, %v1434_v47 }
 0x4ad   :  { %v791_v51 = vadd.f32 %v765_v60, %v760_v9  ;;  %v1902_v9 = vld [vmem:[#allocation19_spill] sm:$0xff] }
 0x4af   :  { %v796_v34 = vadd.f32 %v791_v51, %v790_v38 }
 0x4b3   :  { %v778_v10 = vpop.permute.xlu2 %777 }
 0x4b4   :  { %v780_v24 = vmul.f32 %v778_v10, %v1436_v48 }
 0x4b6   :  { %v793_v8 = vadd.f32 %v785_v35, %v780_v24 }
 0x4b8   :  { %v797_v33 = vadd.f32 %v793_v8, %v792_v37 }
 0x4ba   :  { %v799_v63 = vadd.f32 %v797_v33, %v796_v34 }
 0x4bc   :  { %v800_v5 = vadd.f32 %v799_v63, %v798_v3 }
 0x4be   :  { %v801_v21 = vadd.f32 %v800_v5, %v101_v11 }
 0x4c0   :  { %1242 = vtanh.f32 %v801_v21  ;;  %v693_v60 = vpop.xlane.xlu1 %692 }
 0x4c1   :  { %v694_v30 = vadd.f32 %v1902_v9, %v693_v60 }
 0x4c3   :  { %700 = vperm.xlu0 %1193, %v694_v30  }
 0x4c6   :  { %v1243_v0 = vpop.eup %1242 }
 0x4c7   :  { %855 = vperm.xlu2 %1200, %v1243_v0   ;;  %825 = vperm.xlu1 %1194, %v1243_v0   ;;  %v803_v5 = vmul.f32 %v1243_v0, %v1498_v2 }
 0x4c9   :  { %v804_v8 = vsel %vm235_vm0, %v803_v5, 0.0 }
 0x4cb   :  { %820 = vperm.xlu0 %1193, %v1243_v0  }
 0x4cf   :  { %1205 = vset.pattern.permute.xlu2 %v1875_v18  ;;  %1195 = vset.pattern.permute.xlu1 %v1903_v16 }
 0x4d0   :  { %880 = vperm.xlu2 %1205, %v1243_v0   ;;  %830 = vperm.xlu1 %1195, %v1243_v0  }
 0x4d3   :  { %1196 = vset.pattern.permute.xlu0 %v1889_v1 }
 0x4d4   :  { %835 = vperm.xlu0 %1196, %v1243_v0  }
 0x4d8   :  { %1208 = vset.pattern.permute.xlu2 %v1886_v55  ;;  %1197 = vset.pattern.permute.xlu1 %v1888_v22 }
 0x4d9   :  { %895 = vperm.xlu2 %1208, %v1243_v0   ;;  %840 = vperm.xlu1 %1197, %v1243_v0  }
 0x4dc   :  { %1199 = vset.pattern.permute.xlu0 %v1881_v12 }
 0x4dd   :  { %850 = vperm.xlu0 %1199, %v1243_v0  }
 0x4e1   :  { %1198 = vset.pattern.permute.xlu1 %v1890_v20  ;;  %1210 = vset.pattern.permute.xlu2 %v1877_v32 }
 0x4e2   :  { %845 = vperm.xlu1 %1198, %v1243_v0  }
 0x4e5   :  { %1203 = vset.pattern.permute.xlu0 %v1891_v53 }
 0x4e6   :  { %870 = vperm.xlu0 %1203, %v1243_v0  }
 0x4ea   :  { %1201 = vset.pattern.permute.xlu1 %v1883_v14 }
 0x4eb   :  { %860 = vperm.xlu1 %1201, %v1243_v0  }
 0x4ee   :  { %1207 = vset.pattern.permute.xlu0 %v1876_v28 }
 0x4ef   :  { %890 = vperm.xlu0 %1207, %v1243_v0  }
 0x4f3   :  { %1202 = vset.pattern.permute.xlu1 %v1882_v13 }
 0x4f4   :  { %865 = vperm.xlu1 %1202, %v1243_v0  }
 0x4f7   :  { %1211 = vset.pattern.permute.xlu0 %v1879_v61 }
 0x4fc   :  { %1204 = vset.pattern.permute.xlu1 %v1884_v43 }
 0x4fd   :  { %875 = vperm.xlu1 %1204, %v1243_v0  }
 0x502   :  { %805 = vadd.xlane.f32.xlu2 %v804_v8 }
 0x505   :  { %1206 = vset.pattern.permute.xlu1 %v1885_v57 }
 0x506   :  { %885 = vperm.xlu1 %1206, %v1243_v0  }
 0x50e   :  { %1209 = vset.pattern.permute.xlu1 %v1877_v32 }
 0x521   :  { %v856_v35 = vpop.permute.xlu2 %855 }
 0x522   :  { %v858_v63 = vmul.f32 %v856_v35, %v1424_v40  ;;  %v1904_v35 = vld [vmem:[#allocation18_spill] sm:$0xff] }
 0x52a   :  { %v881_v24 = vpop.permute.xlu2 %880 }
 0x533   :  { %v896_v38 = vpop.permute.xlu2 %895 }
 0x535   :  { %v701_v26 = vpop.permute.xlu0 %700 }
 0x536   :  { %v703_v6 = vsel %vm695_vm5, %v701_v26, 0.0  ;;  %v883_v26 = vmul.f32 %v881_v24, %v1899_v15  ;;  %v1743_v24 = vld [vmem:[%s1809_s2] ss:$0 sm:$0xff] }
 0x537   :  { %v1721_v62 = vadd.f32 %v703_v6, %v1679_v31  ;;  %v898_v6 = vmul.f32 %v896_v38, %v1900_v23 }
 0x539   :  { %v826_v61 = vpop.permute.xlu1 %825 }
 0x53d   :  { %v821_v42 = vpop.permute.xlu0 %820 }
 0x53e   :  { %v823_v11 = vmul.f32 %v821_v42, %v1898_v49 }
 0x542   :  { %v831_v56 = vpop.permute.xlu1 %830 }
 0x543   :  { %v833_v21 = vmul.f32 %v831_v56, %v1440_v50 }
 0x546   :  { %v836_v10 = vpop.permute.xlu0 %835 }
 0x547   :  { %v838_v4 = vmul.f32 %v836_v10, %v1428_v44 }
 0x54b   :  { %v841_v52 = vpop.permute.xlu1 %840 }
 0x54c   :  { %v843_v29 = vmul.f32 %v841_v52, %v1422_v39  ;;  %v828_v52 = vmul.f32 %v826_v61, %v1892_v19  ;;  %v1905_v61 = vld [vmem:[#allocation12_spill] sm:$0xff] }
 0x54d   :  { %v106_v38 = vmul.f32 %v1743_v24, %v1905_v61 }
 0x54f   :  { %v851_v51 = vpop.permute.xlu0 %850 }
 0x550   :  { %v853_v34 = vmul.f32 %v851_v51, %v1426_v41 }
 0x552   :  { %v902_v42 = vadd.f32 %v858_v63, %v853_v34  ;;  %v107_v63 = vadd.f32 %v106_v38, %v1482_v36 }
 0x554   :  { %v846_v2 = vpop.permute.xlu1 %845 }
 0x555   :  { %v848_v7 = vmul.f32 %v846_v2, %v1430_v45  ;;  %v900_v2 = vadd.f32 %v838_v4, %v833_v21 }
 0x557   :  { %v901_v30 = vadd.f32 %v848_v7, %v843_v29 }
 0x558   :  { %v871_v27 = vpop.permute.xlu0 %870 }
 0x559   :  { %v873_v0 = vmul.f32 %v871_v27, %v1897_v17  ;;  %v899_v27 = vadd.f32 %v828_v52, %v823_v11 }
 0x55b   :  { %v907_v4 = vadd.f32 %v900_v2, %v899_v27 }
 0x55d   :  { %v861_v46 = vpop.permute.xlu1 %860 }
 0x55e   :  { %v863_v56 = vmul.f32 %v861_v46, %v1451_v59 }
 0x561   :  { %v891_v31 = vpop.permute.xlu0 %890 }
 0x562   :  { %v893_v5 = vmul.f32 %v891_v31, %v1436_v48 }
 0x564   :  { %v906_v7 = vadd.f32 %v898_v6, %v893_v5 }
 0x566   :  { %v866_v54 = vpop.permute.xlu1 %865 }
 0x567   :  { %v868_v8 = vmul.f32 %v866_v54, %v1449_v58 }
 0x569   :  { %v903_v31 = vadd.f32 %v868_v8, %v863_v56 }
 0x56f   :  { %v876_v37 = vpop.permute.xlu1 %875 }
 0x570   :  { %v878_v33 = vmul.f32 %v876_v37, %v1434_v47  ;;  %v908_v37 = vadd.f32 %v902_v42, %v901_v30 }
 0x572   :  { %v911_v46 = vadd.f32 %v908_v37, %v907_v4 }
 0x575   :  { %v806_v3 = vpop.xlane.xlu2 %805 }
 0x576   :  { %v807_v60 = vadd.f32 %v1902_v9, %v806_v3  ;;  %v904_v9 = vadd.f32 %v878_v33, %v873_v0  ;;  %v1906_v3 = vmov 7  }
 0x578   :  { %v886_v10 = vpop.permute.xlu1 %885  ;;  %813 = vperm.xlu1 %1209, %v807_v60   ;;  %v909_v29 = vadd.f32 %v904_v9, %v903_v31 }
 0x579   :  { %v888_v51 = vmul.f32 %v886_v10, %v1904_v35 }
 0x57b   :  { %v905_v54 = vadd.f32 %v888_v51, %v883_v26  ;;  %v1250_v26 = vld [vmem:[#allocation2] ss:$0 sm:$0xff] }
 0x57d   :  { %v910_v34 = vadd.f32 %v906_v7, %v905_v54 }
 0x57f   :  { %v912_v33 = vadd.f32 %v910_v34, %v909_v29 }
 0x580   :  { %1217 = vset.pattern.permute.xlu1 %v1906_v3 }
 0x581   :  { %v913_v11 = vadd.f32 %v912_v33, %v911_v46 }
 0x583   :  { %v914_v21 = vadd.f32 %v913_v11, %v107_v63 }
 0x585   :  { %1244 = vtanh.f32 %v914_v21 }
 0x58b   :  { %v1245_v60 = vpop.eup %1244 }
 0x58c   :  { %938 = vperm.xlu0 %1211, %v1245_v60   ;;  %933 = vperm.xlu2 %1210, %v1245_v60  }
 0x58d   :  { %968 = vperm.xlu1 %1217, %v1245_v60  }
 0x594   :  { %1214 = vset.pattern.permute.xlu0 %v1888_v22  ;;  %1212 = vset.pattern.permute.xlu2 %v1903_v16 }
 0x595   :  { %1223 = vset.pattern.permute.xlu1 %v1885_v57  ;;  %953 = vperm.xlu0 %1214, %v1245_v60  }
 0x596   :  { %943 = vperm.xlu2 %1212, %v1245_v60   ;;  %998 = vperm.xlu1 %1223, %v1245_v60  }
 0x59d   :  { %1218 = vset.pattern.permute.xlu0 %v1883_v14  ;;  %v1763_v14 = vld [vmem:[%s1813_s6] ss:$0 sm:$0xff]  ;;  %s1322_s6 = smov [#allocation6]  }
 0x59e   :  { %1213 = vset.pattern.permute.xlu2 %v1889_v1  ;;  %973 = vperm.xlu0 %1218, %v1245_v60   ;;  %v916_v57 = vmul.f32 %v1763_v14, %v1245_v60  ;;  %s1054_s27 = sshll.u32 %s1322_s6, 4  ;;  %s1055_s27 = int_to_ptr.vmem [resolvable:$true] %s1054_s27 }
 0x59f   :  { %948 = vperm.xlu2 %1213, %v1245_v60   ;;  %1225 = vset.pattern.permute.xlu1 %v1886_v55 }
 0x5a6   :  { %1221 = vset.pattern.permute.xlu0 %v1884_v43  ;;  %v917_v43 = vsel %vm235_vm0, %v916_v57, 0.0 }
 0x5a7   :  { %1215 = vset.pattern.permute.xlu2 %v1890_v20  ;;  %988 = vperm.xlu0 %1221, %v1245_v60  }
 0x5a8   :  { %958 = vperm.xlu2 %1215, %v1245_v60  }
 0x5af   :  { %1228 = vset.pattern.permute.xlu0 %v1877_v32 }
 0x5b0   :  { %1216 = vset.pattern.permute.xlu2 %v1881_v12 }
 0x5b1   :  { %963 = vperm.xlu2 %1216, %v1245_v60  }
 0x5b9   :  { %1219 = vset.pattern.permute.xlu2 %v1882_v13 }
 0x5ba   :  { %978 = vperm.xlu2 %1219, %v1245_v60  }
 0x5c0   :  { %918 = vadd.xlane.f32.xlu1 %v917_v43 }
 0x5c2   :  { %1220 = vset.pattern.permute.xlu2 %v1891_v53 }
 0x5c3   :  { %983 = vperm.xlu2 %1220, %v1245_v60  }
 0x5cb   :  { %1222 = vset.pattern.permute.xlu2 %v1875_v18 }
 0x5cc   :  { %993 = vperm.xlu2 %1222, %v1245_v60  }
 0x5d4   :  { %1224 = vset.pattern.permute.xlu2 %v1876_v28 }
 0x5d5   :  { %1003 = vperm.xlu2 %1224, %v1245_v60  }
 0x5d9   :  { %1008 = vperm.xlu1 %1225, %v1245_v60  }
 0x5dd   :  { %1226 = vset.pattern.permute.xlu2 %v1877_v32 }
 0x5e1   :  { %1227 = vset.pattern.permute.xlu1 %v1877_v32 }
 0x5e6   :  { %v934_v22 = vpop.permute.xlu2 %933 }
 0x5e7   :  { %v936_v27 = vmul.f32 %v934_v22, %v1898_v49 }
 0x5ea   :  { %v814_v12 = vpop.permute.xlu1 %813 }
 0x5eb   :  { %v816_v13 = vsel %vm808_vm6, %v814_v12, 0.0 }
 0x5ec   :  { %v1774_v55 = vadd.f32 %v816_v13, %v1721_v62 }
 0x5f0   :  { %v944_v1 = vpop.permute.xlu2 %943 }
 0x5f9   :  { %v949_v20 = vpop.permute.xlu2 %948 }
 0x5fa   :  { %v951_v37 = vmul.f32 %v949_v20, %v1428_v44 }
 0x5fe   :  { %v939_v28 = vpop.permute.xlu0 %938 }
 0x5ff   :  { %v969_v53 = vpop.permute.xlu1 %968  ;;  %v941_v10 = vmul.f32 %v939_v28, %v1892_v19 }
 0x600   :  { %v971_v9 = vmul.f32 %v969_v53, %v1424_v40 }
 0x601   :  { %v1012_v38 = vadd.f32 %v941_v10, %v936_v27 }
 0x602   :  { %v959_v18 = vpop.permute.xlu2 %958 }
 0x603   :  { %v961_v7 = vmul.f32 %v959_v18, %v1430_v45 }
 0x607   :  { %v954_v5 = vpop.permute.xlu0 %953 }
 0x608   :  { %v999_v30 = vpop.permute.xlu1 %998  ;;  %v956_v42 = vmul.f32 %v954_v5, %v1422_v39  ;;  %v946_v39 = vmul.f32 %v944_v1, %v1440_v50 }
 0x60a   :  { %v1014_v40 = vadd.f32 %v961_v7, %v956_v42  ;;  %v1013_v34 = vadd.f32 %v951_v37, %v946_v39 }
 0x60b   :  { %v964_v16 = vpop.permute.xlu2 %963 }
 0x60c   :  { %v966_v62 = vmul.f32 %v964_v16, %v1426_v41  ;;  %v1020_v3 = vadd.f32 %v1013_v34, %v1012_v38 }
 0x60e   :  { %v1015_v54 = vadd.f32 %v971_v9, %v966_v62 }
 0x610   :  { %v974_v52 = vpop.permute.xlu0 %973 }
 0x611   :  { %v976_v49 = vmul.f32 %v974_v52, %v1451_v59 }
 0x614   :  { %v979_v0 = vpop.permute.xlu2 %978 }
 0x615   :  { %v981_v61 = vmul.f32 %v979_v0, %v1449_v58  ;;  %v1021_v58 = vadd.f32 %v1015_v54, %v1014_v40 }
 0x617   :  { %v1016_v46 = vadd.f32 %v981_v61, %v976_v49 }
 0x619   :  { %v989_v56 = vpop.permute.xlu0 %988 }
 0x61a   :  { %v991_v41 = vmul.f32 %v989_v56, %v1434_v47 }
 0x61d   :  { %v984_v6 = vpop.permute.xlu2 %983 }
 0x61e   :  { %v986_v51 = vmul.f32 %v984_v6, %v1897_v17  ;;  %v1001_v17 = vmul.f32 %v999_v30, %v1904_v35  ;;  %v1024_v35 = vadd.f32 %v1021_v58, %v1020_v3 }
 0x620   :  { %v1017_v44 = vadd.f32 %v991_v41, %v986_v51 }
 0x622   :  { %v1022_v63 = vadd.f32 %v1017_v44, %v1016_v46 }
 0x626   :  { %v994_v2 = vpop.permute.xlu2 %993 }
 0x627   :  { %v996_v19 = vmul.f32 %v994_v2, %v1899_v15  ;;  %v1907_v15 = vld [vmem:[#allocation11_spill] sm:$0xff] }
 0x628   :  { %v112_v50 = vmul.f32 %v1743_v24, %v1907_v15 }
 0x629   :  { %v1018_v47 = vadd.f32 %v1001_v17, %v996_v19 }
 0x62a   :  { %v113_v59 = vadd.f32 %v112_v50, %v1482_v36 }
 0x62f   :  { %v1004_v31 = vpop.permute.xlu2 %1003 }
 0x630   :  { %v1006_v45 = vmul.f32 %v1004_v31, %v1436_v48 }
 0x633   :  { %v919_v8 = vpop.xlane.xlu1 %918 }
 0x634   :  { %v920_v32 = vadd.f32 %v1250_v26, %v919_v8 }
 0x636   :  { %926 = vperm.xlu2 %1226, %v920_v32  }
 0x64b   :  { %v1009_v4 = vpop.permute.xlu1 %1008 }
 0x64c   :  { %v1011_v29 = vmul.f32 %v1009_v4, %v1900_v23 }
 0x64e   :  { %v1019_v33 = vadd.f32 %v1011_v29, %v1006_v45 }
 0x650   :  { %v1023_v11 = vadd.f32 %v1019_v33, %v1018_v47 }
 0x652   :  { %v1025_v21 = vadd.f32 %v1023_v11, %v1022_v63 }
 0x654   :  { %v1026_v60 = vadd.f32 %v1025_v21, %v1024_v35 }
 0x656   :  { %v1027_v57 = vadd.f32 %v1026_v60, %v113_v59 }
 0x658   :  { %1246 = vtanh.f32 %v1027_v57 }
 0x65e   :  { %v1247_v48 = vpop.eup %1246 }
 0x65f   :  { %v1029_v23 = vmul.f32 %v1763_v14, %v1247_v48  ;;  %1046 = vst.msk [vmem:[#allocation6] sm:$0x3] %vm235_vm0, %v1247_v48 }
 0x660   :  { %1059 = dma.vmem_to_hbm [thread:$0]  %s1055_s27, 32, %s1057_s30, [#allocation5]  }
 0x661   :  { %v1030_v43 = vsel %vm235_vm0, %v1029_v23, 0.0 }
 0x662   :  { %1031 = vadd.xlane.f32.xlu0 %v1030_v43 }
 0x690   :  { %v927_v14 = vpop.permute.xlu2 %926 }
 0x691   :  { %v929_v12 = vsel %vm921_vm7, %v927_v14, 0.0 }
 0x692   :  { %v930_v13 = vadd.f32 %v929_v12, %v1774_v55 }
 0x6d5   :  { %v1032_v36 = vpop.xlane.xlu0 %1031 }
 0x6d6   :  { %v1033_v24 = vadd.f32 %v1250_v26, %v1032_v36 }
 0x6d8   :  { %1039 = vperm.xlu1 %1227, %v1033_v24  }
 0x74a   :  { %v1040_v22 = vpop.permute.xlu1 %1039 }
 0x74b   :  { %v1042_v1 = vsel %vm1034_vm8, %v1040_v22, 0.0 }
 0x74c   :  { %v1043_v20 = vadd.f32 %v1042_v1, %v930_v13 }
 0x74e   :  { %1045 = vst.msk [vmem:[%s1815_s8] sm:$0x3] %vm1044_vm9, %v1043_v20 }
 0x74f   :  { %1301 = dma.done.wait [#allocation5], 32  }
 0x750   :  { %1302 = vsyncadd [#allocation5], 4294967264 }
 0x751   :  { %1066 = vsyncpa [#allocation4], 1 }
 0x752   :  { %1067 = vsyncpa [#allocation5], 1 }

</bundles_post_ra>
